<compile_context>
chip_gen: v7x
topology: tpu7x:2x2x1
jax: 0.10.0
libtpu: 0.0.40
codegen_flags: <defaults>
</compile_context>

<pallas_src>
import functools

import jax
import jax.numpy as jnp
from jax.experimental import pallas as pl
from jax.experimental.pallas import tpu as pltpu

# Full-f32 MXU passes: the PyTorch reference is float32; DEFAULT would truncate
# operands to bf16 on TPU and diverge from the reference.
_HI = jax.lax.Precision.HIGHEST


def mha_kernel(x_ref, wq_ref, wk_ref, wv_ref, wp_ref, bp_ref, o_ref,
               *, n_heads, head_size):
    # x_ref: (1, T, C); wq/wk/wv_ref: (C, nH*H); wp_ref: (nH*H, C); bp_ref: (1, C)
    x = x_ref[0]                                   # (T, C)
    T, C = x.shape
    scale = head_size ** -0.5                      # keys.shape[-1] ** (-0.5)

    # Fused, lane-dense projections: one wide MXU matmul each (all heads packed
    # on the lane axis).  Scale folded into q: T*nH*H multiplies, not nH*T*T.
    q_all = jnp.dot(x, wq_ref[...], precision=_HI,
                    preferred_element_type=jnp.float32) * scale
    k_all = jnp.dot(x, wk_ref[...], precision=_HI,
                    preferred_element_type=jnp.float32)
    v_all = jnp.dot(x, wv_ref[...], precision=_HI,
                    preferred_element_type=jnp.float32)
    # One hoisted XLU transpose shared by all heads (instead of nH transposes).
    k_all_t = k_all.T                              # (nH*H, T)

    # Causal mask (== tril[:T, :T] != 0), hoisted out of the head loop.  Large
    # finite negative instead of -inf so fully-masked (padded) rows can never
    # produce NaN once T-tiling is added.
    row = jax.lax.broadcasted_iota(jnp.int32, (T, T), 0)
    col = jax.lax.broadcasted_iota(jnp.int32, (T, T), 1)
    causal = row >= col
    neg_big = jnp.finfo(jnp.float32).min

    wp = wp_ref[...]                               # (nH*H, C), loaded once

    out_acc = jnp.zeros((T, C), dtype=jnp.float32)
    for h in range(n_heads):                       # small static unroll; all
        lo = h * head_size                         # per-head intermediates die
        q = q_all[:, lo:lo + head_size]            # (T, H)  at the accumulate.
        kt = k_all_t[lo:lo + head_size, :]         # (H, T)
        v = v_all[:, lo:lo + head_size]            # (T, H)

        s = jnp.dot(q, kt, precision=_HI,
                    preferred_element_type=jnp.float32)            # (T, T)
        s = jnp.where(causal, s, neg_big)
        s = s - jnp.max(s, axis=-1, keepdims=True)                 # stable softmax
        p = jnp.exp(s)                                             # EUP
        inv_denom = 1.0 / jnp.sum(p, axis=-1, keepdims=True)       # exact, (T, 1)
        # dropout(p): identity in eval mode

        # Normalize AFTER p@v: scales (T, H) rows instead of (T, T) probs.
        head_out = jnp.dot(p, v, precision=_HI,
                           preferred_element_type=jnp.float32) * inv_denom
        # Accumulate the output projection per head (no lane-axis concat).
        out_acc = out_acc + jnp.dot(head_out, wp[lo:lo + head_size, :],
                                    precision=_HI,
                                    preferred_element_type=jnp.float32)

    out = out_acc + bp_ref[...]
    # dropout(out): identity in eval mode
    o_ref[0] = out.astype(o_ref.dtype)


def multi_head_attention(x, wq, wk, wv, wp, bp):
    """x: (B, T, C); wq/wk/wv: (nH, C, H); wp: (nH*H, C); bp: (1, C)."""
    B, T, C = x.shape
    n_heads, _, head_size = wq.shape
    hd = n_heads * head_size

    # Pack per-head weights into lane-dense (C, nH*H) slabs.  Column order is
    # head-major, matching torch.cat([head(x) for head in heads], dim=-1) and
    # therefore the row order that `wp` expects.
    pack = lambda w: jnp.transpose(w, (1, 0, 2)).reshape(C, hd)
    wq_p, wk_p, wv_p = pack(wq), pack(wk), pack(wv)

    kernel = functools.partial(mha_kernel, n_heads=n_heads, head_size=head_size)
    return pl.pallas_call(
        kernel,
        out_shape=jax.ShapeDtypeStruct((B, T, C), x.dtype),
        grid_spec=pltpu.PrefetchScalarGridSpec(
            num_scalar_prefetch=0,
            grid=(B,),
            in_specs=[
                pl.BlockSpec((1, T, C), lambda b: (b, 0, 0)),
                pl.BlockSpec((C, hd), lambda b: (0, 0)),   # grid-invariant weights
                pl.BlockSpec((C, hd), lambda b: (0, 0)),
                pl.BlockSpec((C, hd), lambda b: (0, 0)),
                pl.BlockSpec((hd, C), lambda b: (0, 0)),
                pl.BlockSpec((1, C), lambda b: (0, 0)),
            ],
            out_specs=pl.BlockSpec((1, T, C), lambda b: (b, 0, 0)),
        ),
        compiler_params=pltpu.CompilerParams(
            dimension_semantics=("parallel",),
            vmem_limit_bytes=32 * 1024 * 1024,   # explicit cap (fits v5e/v6e/v7x)
        ),
    )(x, wq_p, wk_p, wv_p, wp, bp)


def reference_mha(x, wq, wk, wv, wp, bp):
    """Pure-JAX reference matching the PyTorch forward (eval mode), f32-exact."""
    B, T, C = x.shape
    n_heads, _, H = wq.shape
    tril = jnp.tril(jnp.ones((T, T), dtype=bool))
    with jax.default_matmul_precision("highest"):
        outs = []
        for h in range(n_heads):
            q = x @ wq[h]
            k = x @ wk[h]
            v = x @ wv[h]
            s = (q @ jnp.swapaxes(k, -2, -1)) * (H ** -0.5)
            s = jnp.where(tril, s, -jnp.inf)
            p = jax.nn.softmax(s, axis=-1)
            outs.append(p @ v)
        cat = jnp.concatenate(outs, axis=-1)
        return cat @ wp + bp


if __name__ == "__main__":
    # Small shapes consistent with the module's forward.
    B, T = 2, 8                # batch, sequence length (== block_size)
    n_embed = 32
    n_heads = 4
    head_size = 8              # n_heads * head_size == n_embed

    key = jax.random.PRNGKey(0)
    kx, kq, kk, kv, kp, kb = jax.random.split(key, 6)

    x = jax.random.normal(kx, (B, T, n_embed), dtype=jnp.float32)

    # Deterministic parameter init (equivalent to torch Linear weights, stored
    # pre-transposed so the kernel computes y = x @ W).
    scale = n_embed ** -0.5
    wq = jax.random.normal(kq, (n_heads, n_embed, head_size), jnp.float32) * scale
    wk = jax.random.normal(kk, (n_heads, n_embed, head_size), jnp.float32) * scale
    wv = jax.random.normal(kv, (n_heads, n_embed, head_size), jnp.float32) * scale
    wp = jax.random.normal(kp, (n_heads * head_size, n_embed), jnp.float32) * scale
    bp = (jax.random.normal(kb, (1, n_embed), jnp.float32) * 0.01)

    out = multi_head_attention(x, wq, wk, wv, wp, bp)
    out = jax.block_until_ready(out)

    ref = reference_mha(x, wq, wk, wv, wp, bp)
    assert out.shape == (B, T, n_embed)
    # Kernel and reference both use full-f32 matmuls and exact softmax
    # normalization; remaining differences are operation-ordering round-off.
    assert jnp.allclose(out, ref, atol=2e-3, rtol=2e-3), "mismatch vs reference"

    print("KERNEL_OK")
</pallas_src>

<mosaic_0001>
module attributes {stable_mosaic.version = 11 : i64} {
  func.func @mha_kernel(%arg0: i32, %arg1: memref<1x8x32xf32, #tpu.memory_space<vmem>>, %arg2: memref<32x32xf32, #tpu.memory_space<vmem>>, %arg3: memref<32x32xf32, #tpu.memory_space<vmem>>, %arg4: memref<32x32xf32, #tpu.memory_space<vmem>>, %arg5: memref<32x32xf32, #tpu.memory_space<vmem>>, %arg6: memref<1x32xf32, #tpu.memory_space<vmem>>, %arg7: memref<1x8x32xf32, #tpu.memory_space<vmem>>) attributes {dimension_semantics = [#tpu.dimension_semantics<parallel>], iteration_bounds = array<i64: 2>, scalar_prefetch = 0 : i64, scratch_operands = 0 : i64, tpu.core_type = #tpu.core_type<tc>, window_params = [{transform_indices = @transform_0, window_bounds = array<i64: 1, 8, 32>}, {pipeline_mode = #tpu.pipeline_mode<synchronous>, transform_indices = @transform_1, window_bounds = array<i64: 32, 32>}, {pipeline_mode = #tpu.pipeline_mode<synchronous>, transform_indices = @transform_2, window_bounds = array<i64: 32, 32>}, {pipeline_mode = #tpu.pipeline_mode<synchronous>, transform_indices = @transform_3, window_bounds = array<i64: 32, 32>}, {pipeline_mode = #tpu.pipeline_mode<synchronous>, transform_indices = @transform_4, window_bounds = array<i64: 32, 32>}, {pipeline_mode = #tpu.pipeline_mode<synchronous>, transform_indices = @transform_5, window_bounds = array<i64: 1, 32>}, {transform_indices = @transform_6, window_bounds = array<i64: 1, 8, 32>}]} {
    %c0 = arith.constant 0 : index
    %c0_0 = arith.constant 0 : index
    %c0_1 = arith.constant 0 : index
    %0 = vector.load %arg1[%c0, %c0_0, %c0_1] : memref<1x8x32xf32, #tpu.memory_space<vmem>>, vector<1x8x32xf32>
    %1 = vector.shape_cast %0 : vector<1x8x32xf32> to vector<8x32xf32>
    %c0_2 = arith.constant 0 : index
    %c0_3 = arith.constant 0 : index
    %2 = vector.load %arg2[%c0_2, %c0_3] : memref<32x32xf32, #tpu.memory_space<vmem>>, vector<32x32xf32>
    %cst = arith.constant dense<0.000000e+00> : vector<8x32xf32>
    %3 = tpu.matmul %1, %2, %cst {dimension_numbers = #tpu.dot_dimension_numbers<[1], [0], [0], [1], [0, 0, 1, 1], [], []>, precision = #tpu.contract_precision<fp32>} : vector<8x32xf32>, vector<32x32xf32>, vector<8x32xf32> -> vector<8x32xf32>
    %cst_4 = arith.constant 0.353553385 : f32
    %4 = vector.broadcast %cst_4 : f32 to vector<8x32xf32>
    %5 = arith.mulf %3, %4 : vector<8x32xf32>
    %c0_5 = arith.constant 0 : index
    %c0_6 = arith.constant 0 : index
    %6 = vector.load %arg3[%c0_5, %c0_6] : memref<32x32xf32, #tpu.memory_space<vmem>>, vector<32x32xf32>
    %cst_7 = arith.constant dense<0.000000e+00> : vector<8x32xf32>
    %7 = tpu.matmul %1, %6, %cst_7 {dimension_numbers = #tpu.dot_dimension_numbers<[1], [0], [0], [1], [0, 0, 1, 1], [], []>, precision = #tpu.contract_precision<fp32>} : vector<8x32xf32>, vector<32x32xf32>, vector<8x32xf32> -> vector<8x32xf32>
    %c0_8 = arith.constant 0 : index
    %c0_9 = arith.constant 0 : index
    %8 = vector.load %arg4[%c0_8, %c0_9] : memref<32x32xf32, #tpu.memory_space<vmem>>, vector<32x32xf32>
    %cst_10 = arith.constant dense<0.000000e+00> : vector<8x32xf32>
    %9 = tpu.matmul %1, %8, %cst_10 {dimension_numbers = #tpu.dot_dimension_numbers<[1], [0], [0], [1], [0, 0, 1, 1], [], []>, precision = #tpu.contract_precision<fp32>} : vector<8x32xf32>, vector<32x32xf32>, vector<8x32xf32> -> vector<8x32xf32>
    %10 = tpu.transpose %7, [1, 0] : vector<8x32xf32> -> vector<32x8xf32>
    %11 = tpu.iota {dimensions = array<i32: 0>} : vector<8x8xi32>
    %12 = tpu.iota {dimensions = array<i32: 1>} : vector<8x8xi32>
    %13 = arith.cmpi sge, %11, %12 : vector<8x8xi32>
    %c0_11 = arith.constant 0 : index
    %c0_12 = arith.constant 0 : index
    %14 = vector.load %arg5[%c0_11, %c0_12] : memref<32x32xf32, #tpu.memory_space<vmem>>, vector<32x32xf32>
    %cst_13 = arith.constant 0.000000e+00 : f32
    %15 = vector.broadcast %cst_13 : f32 to vector<8x32xf32>
    %16 = vector.extract_strided_slice %5 {offsets = [0, 0], sizes = [8, 8], strides = [1, 1]} : vector<8x32xf32> to vector<8x8xf32>
    %17 = vector.extract_strided_slice %10 {offsets = [0, 0], sizes = [8, 8], strides = [1, 1]} : vector<32x8xf32> to vector<8x8xf32>
    %18 = vector.extract_strided_slice %9 {offsets = [0, 0], sizes = [8, 8], strides = [1, 1]} : vector<8x32xf32> to vector<8x8xf32>
    %cst_14 = arith.constant dense<0.000000e+00> : vector<8x8xf32>
    %19 = tpu.matmul %16, %17, %cst_14 {dimension_numbers = #tpu.dot_dimension_numbers<[1], [0], [0], [1], [0, 0, 1, 1], [], []>, precision = #tpu.contract_precision<fp32>} : vector<8x8xf32>, vector<8x8xf32>, vector<8x8xf32> -> vector<8x8xf32>
    %cst_15 = arith.constant -3.40282347E+38 : f32
    %20 = vector.broadcast %cst_15 : f32 to vector<8x8xf32>
    %21 = arith.select %13, %19, %20 : vector<8x8xi1>, vector<8x8xf32>
    %cst_16 = arith.constant dense<0xFF800000> : vector<8xf32>
    %22 = vector.multi_reduction <maximumf>, %21, %cst_16 [1] : vector<8x8xf32> to vector<8xf32>
    %23 = vector.shape_cast %22 : vector<8xf32> to vector<8x1xf32>
    %24 = vector.broadcast %23 : vector<8x1xf32> to vector<8x8xf32>
    %25 = arith.subf %21, %24 : vector<8x8xf32>
    %26 = math.exp %25 : vector<8x8xf32>
    %cst_17 = arith.constant dense<0.000000e+00> : vector<8xf32>
    %27 = vector.multi_reduction <add>, %26, %cst_17 [1] : vector<8x8xf32> to vector<8xf32>
    %28 = vector.shape_cast %27 : vector<8xf32> to vector<8x1xf32>
    %cst_18 = arith.constant 1.000000e+00 : f32
    %29 = vector.broadcast %cst_18 : f32 to vector<8x1xf32>
    %30 = arith.divf %29, %28 : vector<8x1xf32>
    %cst_19 = arith.constant dense<0.000000e+00> : vector<8x8xf32>
    %31 = tpu.matmul %26, %18, %cst_19 {dimension_numbers = #tpu.dot_dimension_numbers<[1], [0], [0], [1], [0, 0, 1, 1], [], []>, precision = #tpu.contract_precision<fp32>} : vector<8x8xf32>, vector<8x8xf32>, vector<8x8xf32> -> vector<8x8xf32>
    %32 = vector.broadcast %30 : vector<8x1xf32> to vector<8x8xf32>
    %33 = arith.mulf %31, %32 : vector<8x8xf32>
    %34 = vector.extract_strided_slice %14 {offsets = [0, 0], sizes = [8, 32], strides = [1, 1]} : vector<32x32xf32> to vector<8x32xf32>
    %cst_20 = arith.constant dense<0.000000e+00> : vector<8x32xf32>
    %35 = tpu.matmul %33, %34, %cst_20 {dimension_numbers = #tpu.dot_dimension_numbers<[1], [0], [0], [1], [0, 0, 1, 1], [], []>, precision = #tpu.contract_precision<fp32>} : vector<8x8xf32>, vector<8x32xf32>, vector<8x32xf32> -> vector<8x32xf32>
    %36 = arith.addf %15, %35 : vector<8x32xf32>
    %37 = vector.extract_strided_slice %5 {offsets = [0, 8], sizes = [8, 8], strides = [1, 1]} : vector<8x32xf32> to vector<8x8xf32>
    %38 = vector.extract_strided_slice %10 {offsets = [8, 0], sizes = [8, 8], strides = [1, 1]} : vector<32x8xf32> to vector<8x8xf32>
    %39 = vector.extract_strided_slice %9 {offsets = [0, 8], sizes = [8, 8], strides = [1, 1]} : vector<8x32xf32> to vector<8x8xf32>
    %cst_21 = arith.constant dense<0.000000e+00> : vector<8x8xf32>
    %40 = tpu.matmul %37, %38, %cst_21 {dimension_numbers = #tpu.dot_dimension_numbers<[1], [0], [0], [1], [0, 0, 1, 1], [], []>, precision = #tpu.contract_precision<fp32>} : vector<8x8xf32>, vector<8x8xf32>, vector<8x8xf32> -> vector<8x8xf32>
    %cst_22 = arith.constant -3.40282347E+38 : f32
    %41 = vector.broadcast %cst_22 : f32 to vector<8x8xf32>
    %42 = arith.select %13, %40, %41 : vector<8x8xi1>, vector<8x8xf32>
    %cst_23 = arith.constant dense<0xFF800000> : vector<8xf32>
    %43 = vector.multi_reduction <maximumf>, %42, %cst_23 [1] : vector<8x8xf32> to vector<8xf32>
    %44 = vector.shape_cast %43 : vector<8xf32> to vector<8x1xf32>
    %45 = vector.broadcast %44 : vector<8x1xf32> to vector<8x8xf32>
    %46 = arith.subf %42, %45 : vector<8x8xf32>
    %47 = math.exp %46 : vector<8x8xf32>
    %cst_24 = arith.constant dense<0.000000e+00> : vector<8xf32>
    %48 = vector.multi_reduction <add>, %47, %cst_24 [1] : vector<8x8xf32> to vector<8xf32>
    %49 = vector.shape_cast %48 : vector<8xf32> to vector<8x1xf32>
    %cst_25 = arith.constant 1.000000e+00 : f32
    %50 = vector.broadcast %cst_25 : f32 to vector<8x1xf32>
    %51 = arith.divf %50, %49 : vector<8x1xf32>
    %cst_26 = arith.constant dense<0.000000e+00> : vector<8x8xf32>
    %52 = tpu.matmul %47, %39, %cst_26 {dimension_numbers = #tpu.dot_dimension_numbers<[1], [0], [0], [1], [0, 0, 1, 1], [], []>, precision = #tpu.contract_precision<fp32>} : vector<8x8xf32>, vector<8x8xf32>, vector<8x8xf32> -> vector<8x8xf32>
    %53 = vector.broadcast %51 : vector<8x1xf32> to vector<8x8xf32>
    %54 = arith.mulf %52, %53 : vector<8x8xf32>
    %55 = vector.extract_strided_slice %14 {offsets = [8, 0], sizes = [8, 32], strides = [1, 1]} : vector<32x32xf32> to vector<8x32xf32>
    %cst_27 = arith.constant dense<0.000000e+00> : vector<8x32xf32>
    %56 = tpu.matmul %54, %55, %cst_27 {dimension_numbers = #tpu.dot_dimension_numbers<[1], [0], [0], [1], [0, 0, 1, 1], [], []>, precision = #tpu.contract_precision<fp32>} : vector<8x8xf32>, vector<8x32xf32>, vector<8x32xf32> -> vector<8x32xf32>
    %57 = arith.addf %36, %56 : vector<8x32xf32>
    %58 = vector.extract_strided_slice %5 {offsets = [0, 16], sizes = [8, 8], strides = [1, 1]} : vector<8x32xf32> to vector<8x8xf32>
    %59 = vector.extract_strided_slice %10 {offsets = [16, 0], sizes = [8, 8], strides = [1, 1]} : vector<32x8xf32> to vector<8x8xf32>
    %60 = vector.extract_strided_slice %9 {offsets = [0, 16], sizes = [8, 8], strides = [1, 1]} : vector<8x32xf32> to vector<8x8xf32>
    %cst_28 = arith.constant dense<0.000000e+00> : vector<8x8xf32>
    %61 = tpu.matmul %58, %59, %cst_28 {dimension_numbers = #tpu.dot_dimension_numbers<[1], [0], [0], [1], [0, 0, 1, 1], [], []>, precision = #tpu.contract_precision<fp32>} : vector<8x8xf32>, vector<8x8xf32>, vector<8x8xf32> -> vector<8x8xf32>
    %cst_29 = arith.constant -3.40282347E+38 : f32
    %62 = vector.broadcast %cst_29 : f32 to vector<8x8xf32>
    %63 = arith.select %13, %61, %62 : vector<8x8xi1>, vector<8x8xf32>
    %cst_30 = arith.constant dense<0xFF800000> : vector<8xf32>
    %64 = vector.multi_reduction <maximumf>, %63, %cst_30 [1] : vector<8x8xf32> to vector<8xf32>
    %65 = vector.shape_cast %64 : vector<8xf32> to vector<8x1xf32>
    %66 = vector.broadcast %65 : vector<8x1xf32> to vector<8x8xf32>
    %67 = arith.subf %63, %66 : vector<8x8xf32>
    %68 = math.exp %67 : vector<8x8xf32>
    %cst_31 = arith.constant dense<0.000000e+00> : vector<8xf32>
    %69 = vector.multi_reduction <add>, %68, %cst_31 [1] : vector<8x8xf32> to vector<8xf32>
    %70 = vector.shape_cast %69 : vector<8xf32> to vector<8x1xf32>
    %cst_32 = arith.constant 1.000000e+00 : f32
    %71 = vector.broadcast %cst_32 : f32 to vector<8x1xf32>
    %72 = arith.divf %71, %70 : vector<8x1xf32>
    %cst_33 = arith.constant dense<0.000000e+00> : vector<8x8xf32>
    %73 = tpu.matmul %68, %60, %cst_33 {dimension_numbers = #tpu.dot_dimension_numbers<[1], [0], [0], [1], [0, 0, 1, 1], [], []>, precision = #tpu.contract_precision<fp32>} : vector<8x8xf32>, vector<8x8xf32>, vector<8x8xf32> -> vector<8x8xf32>
    %74 = vector.broadcast %72 : vector<8x1xf32> to vector<8x8xf32>
    %75 = arith.mulf %73, %74 : vector<8x8xf32>
    %76 = vector.extract_strided_slice %14 {offsets = [16, 0], sizes = [8, 32], strides = [1, 1]} : vector<32x32xf32> to vector<8x32xf32>
    %cst_34 = arith.constant dense<0.000000e+00> : vector<8x32xf32>
    %77 = tpu.matmul %75, %76, %cst_34 {dimension_numbers = #tpu.dot_dimension_numbers<[1], [0], [0], [1], [0, 0, 1, 1], [], []>, precision = #tpu.contract_precision<fp32>} : vector<8x8xf32>, vector<8x32xf32>, vector<8x32xf32> -> vector<8x32xf32>
    %78 = arith.addf %57, %77 : vector<8x32xf32>
    %79 = vector.extract_strided_slice %5 {offsets = [0, 24], sizes = [8, 8], strides = [1, 1]} : vector<8x32xf32> to vector<8x8xf32>
    %80 = vector.extract_strided_slice %10 {offsets = [24, 0], sizes = [8, 8], strides = [1, 1]} : vector<32x8xf32> to vector<8x8xf32>
    %81 = vector.extract_strided_slice %9 {offsets = [0, 24], sizes = [8, 8], strides = [1, 1]} : vector<8x32xf32> to vector<8x8xf32>
    %cst_35 = arith.constant dense<0.000000e+00> : vector<8x8xf32>
    %82 = tpu.matmul %79, %80, %cst_35 {dimension_numbers = #tpu.dot_dimension_numbers<[1], [0], [0], [1], [0, 0, 1, 1], [], []>, precision = #tpu.contract_precision<fp32>} : vector<8x8xf32>, vector<8x8xf32>, vector<8x8xf32> -> vector<8x8xf32>
    %cst_36 = arith.constant -3.40282347E+38 : f32
    %83 = vector.broadcast %cst_36 : f32 to vector<8x8xf32>
    %84 = arith.select %13, %82, %83 : vector<8x8xi1>, vector<8x8xf32>
    %cst_37 = arith.constant dense<0xFF800000> : vector<8xf32>
    %85 = vector.multi_reduction <maximumf>, %84, %cst_37 [1] : vector<8x8xf32> to vector<8xf32>
    %86 = vector.shape_cast %85 : vector<8xf32> to vector<8x1xf32>
    %87 = vector.broadcast %86 : vector<8x1xf32> to vector<8x8xf32>
    %88 = arith.subf %84, %87 : vector<8x8xf32>
    %89 = math.exp %88 : vector<8x8xf32>
    %cst_38 = arith.constant dense<0.000000e+00> : vector<8xf32>
    %90 = vector.multi_reduction <add>, %89, %cst_38 [1] : vector<8x8xf32> to vector<8xf32>
    %91 = vector.shape_cast %90 : vector<8xf32> to vector<8x1xf32>
    %cst_39 = arith.constant 1.000000e+00 : f32
    %92 = vector.broadcast %cst_39 : f32 to vector<8x1xf32>
    %93 = arith.divf %92, %91 : vector<8x1xf32>
    %cst_40 = arith.constant dense<0.000000e+00> : vector<8x8xf32>
    %94 = tpu.matmul %89, %81, %cst_40 {dimension_numbers = #tpu.dot_dimension_numbers<[1], [0], [0], [1], [0, 0, 1, 1], [], []>, precision = #tpu.contract_precision<fp32>} : vector<8x8xf32>, vector<8x8xf32>, vector<8x8xf32> -> vector<8x8xf32>
    %95 = vector.broadcast %93 : vector<8x1xf32> to vector<8x8xf32>
    %96 = arith.mulf %94, %95 : vector<8x8xf32>
    %97 = vector.extract_strided_slice %14 {offsets = [24, 0], sizes = [8, 32], strides = [1, 1]} : vector<32x32xf32> to vector<8x32xf32>
    %cst_41 = arith.constant dense<0.000000e+00> : vector<8x32xf32>
    %98 = tpu.matmul %96, %97, %cst_41 {dimension_numbers = #tpu.dot_dimension_numbers<[1], [0], [0], [1], [0, 0, 1, 1], [], []>, precision = #tpu.contract_precision<fp32>} : vector<8x8xf32>, vector<8x32xf32>, vector<8x32xf32> -> vector<8x32xf32>
    %99 = arith.addf %78, %98 : vector<8x32xf32>
    %c0_42 = arith.constant 0 : index
    %c0_43 = arith.constant 0 : index
    %100 = vector.load %arg6[%c0_42, %c0_43] : memref<1x32xf32, #tpu.memory_space<vmem>>, vector<1x32xf32>
    %101 = vector.broadcast %100 : vector<1x32xf32> to vector<8x32xf32>
    %102 = arith.addf %99, %101 : vector<8x32xf32>
    %c0_44 = arith.constant 0 : index
    %c0_45 = arith.constant 0 : index
    %c0_46 = arith.constant 0 : index
    %103 = vector.load %arg7[%c0_44, %c0_45, %c0_46] : memref<1x8x32xf32, #tpu.memory_space<vmem>>, vector<1x8x32xf32>
    %104 = vector.shape_cast %103 : vector<1x8x32xf32> to vector<8x32xf32>
    %105 = vector.shape_cast %102 : vector<8x32xf32> to vector<1x8x32xf32>
    tpu.vector_store %arg7[%c0_44, %c0_45, %c0_46], %105 {strides = array<i32>} : memref<1x8x32xf32, #tpu.memory_space<vmem>>, vector<1x8x32xf32>,
    return
  }
  func.func @transform_0(%arg0: i32) -> (i32, i32, i32) {
    %c0_i32 = arith.constant 0 : i32
    %c0_i32_0 = arith.constant 0 : i32
    %c0_i32_1 = arith.constant 0 : i32
    return %arg0, %c0_i32, %c0_i32_0 : i32, i32, i32
  }
  func.func @transform_1(%arg0: i32) -> (i32, i32) {
    %c0_i32 = arith.constant 0 : i32
    %c0_i32_0 = arith.constant 0 : i32
    %c0_i32_1 = arith.constant 0 : i32
    return %c0_i32, %c0_i32_0 : i32, i32
  }
  func.func @transform_2(%arg0: i32) -> (i32, i32) {
    %c0_i32 = arith.constant 0 : i32
    %c0_i32_0 = arith.constant 0 : i32
    %c0_i32_1 = arith.constant 0 : i32
    return %c0_i32, %c0_i32_0 : i32, i32
  }
  func.func @transform_3(%arg0: i32) -> (i32, i32) {
    %c0_i32 = arith.constant 0 : i32
    %c0_i32_0 = arith.constant 0 : i32
    %c0_i32_1 = arith.constant 0 : i32
    return %c0_i32, %c0_i32_0 : i32, i32
  }
  func.func @transform_4(%arg0: i32) -> (i32, i32) {
    %c0_i32 = arith.constant 0 : i32
    %c0_i32_0 = arith.constant 0 : i32
    %c0_i32_1 = arith.constant 0 : i32
    return %c0_i32, %c0_i32_0 : i32, i32
  }
  func.func @transform_5(%arg0: i32) -> (i32, i32) {
    %c0_i32 = arith.constant 0 : i32
    %c0_i32_0 = arith.constant 0 : i32
    %c0_i32_1 = arith.constant 0 : i32
    return %c0_i32, %c0_i32_0 : i32, i32
  }
  func.func @transform_6(%arg0: i32) -> (i32, i32, i32) {
    %c0_i32 = arith.constant 0 : i32
    %c0_i32_0 = arith.constant 0 : i32
    %c0_i32_1 = arith.constant 0 : i32
    return %arg0, %c0_i32, %c0_i32_0 : i32, i32, i32
  }
}

</mosaic_0001>

<bundles_post_ra>
// kernel: tpu_custom_call.1
= control target key start
LH: loop header
LB: loop body
LE: loop exit
PB: predicated region body
PF: predicated region fallthrough
CT: control target
= control target key end

     0   :  { %11 = vsyncpa [#allocation3], 0  ;;  %s9627_s0 = inlined_call_operand.hbm [shape: f32[2,8,32], index: 0, kind: input, shape index: {}]   ;;  %s9628_s1 = inlined_call_operand.hbm [shape: f32[32,32], index: 1, kind: input, shape index: {}]   ;;  %s9629_s2 = inlined_call_operand.hbm [shape: f32[32,32], index: 2, kind: input, shape index: {}]   ;;  %s9630_s3 = inlined_call_operand.hbm [shape: f32[32,32], index: 3, kind: input, shape index: {}]   ;;  %s9631_s4 = inlined_call_operand.hbm [shape: f32[32,32], index: 4, kind: input, shape index: {}]   ;;  %s9632_s5 = inlined_call_operand.vmem [shape: f32[1,32], index: 5, kind: input, shape index: {}]   ;;  %s9633_s6 = inlined_call_operand.hbm [shape: f32[2,8,32], index: 6, kind: output, shape index: {}]  }
   0x1   :  { %13 = vsyncpa [#allocation3 + $0x1], 0 }
   0x2   :  { %14 = vsyncpa [#allocation6], 0 }
   0x3   :  { %15 = vsyncpa [#allocation9], 0 }
   0x4   :  { %16 = vsyncpa [#allocation4], 0 }
   0x5   :  { %18 = vsyncpa [#allocation4 + $0x1], 0  ;;  %s8818_s21 = smov 0   ;;  %s8820_s22 = smov 0  }
   0x6   :  { %s8822_s23 = smov 0   ;;  %s8824_s24 = smov 0  }
   0x7 LB: > { %s8769_s25 = smov [#allocation5]   ;;  %s8839_s27 = sadd.s32 4294967295, %s8767_s24   ;;  %s8767_s24 = sphi %s8824_s24, %s9657_s24   ;;  %s8763_s23 = sphi %s8822_s23, %s9656_s23   ;;  %s8759_s22 = sphi %s8820_s22, %s9655_s22   ;;  %s8755_s21 = sphi %s8818_s21, %s9654_s21  }
   0x8   : > { %s198_s26 = sshll.u32 %s8769_s25, 4  ;;  %p7410_p0 = scmp.ge.s32.totalorder %s8767_s24, 1  ;;  %s8844_s26 = int_to_ptr.vmem [resolvable:$true] %s198_s26 }
   0x9   : > { %p9634_p1 = scmp.eq.s32.totalorder %s8839_s27, 0  ;;  %p186_p2 = scmp.lt.s32.totalorder %s8767_s24, 3 }
   0xa   : > { %s8770_s29 = smov [#allocation8]   ;;  %s8771_s8 = smov [#allocation7]  }
   0xb   : > { %p8846_p3 = pnand %p7410_p0, %p186_p2  ;;  %s224_s30 = sshll.u32 %s8770_s29, 4  ;;  %s8859_s30 = int_to_ptr.vmem [resolvable:$true] %s224_s30 }
   0xc   : > { %s211_s9 = sshll.u32 %s8771_s8, 4  ;;  %s8551_s12 = scalar_lea.hbm %s9628_s1, 512  ;;  %s8861_s9 = int_to_ptr.vmem [resolvable:$true] %s211_s9 }
   0xd   : > { %s9637_s28 = scalar_select %p8846_p3, 1, 0 }
   0xe   : > { %p8460_p5 = pneg %p8846_p3  ;;  %p8552_p7 = scmp.ne.s32.totalorder %s9628_s1, %s8551_s12 }
   0xf   : > { %p8558_p11 = scmp.lt.u32.totalorder %s8551_s12, %s9628_s1 }
  0x10   : > { %p8855_p6 = pnand %p8460_p5, %p9634_p1 }
  0x12   : > { %p8871_p8 = pneg %p8855_p6 }
  0x14   : > { %p8554_p9 = pnand %p8871_p8, %p8552_p7 }
  0x16   : > { %p8555_p10 = pneg %p8554_p9 }
  0x18   : > { %p8560_p12 = pnand %p8558_p11, %p8555_p10 }
  0x1a   : > { %8563 = shalt.err (!%p8560_p12)
}
  0x1b   : > { %s8564_s18 = scalar_lea.vmem %s8844_s26, 512  ;;  %p8572_p5 = scmp.lt.s32.totalorder %s8844_s26, %s8844_s26 }
  0x1c   : > { %p8565_p13 = scmp.ne.s32.totalorder %s8844_s26, %s8564_s18  ;;  %p8573_p4 = scmp.lt.s32.totalorder %s8564_s18, %s8564_s18 }
  0x1e   : > { %p8567_p0 = pnand %p8565_p13, %p8871_p8  ;;  %p8574_p7 = por %p8573_p4, %p8572_p5 }
  0x20   : > { %p8568_p2 = pneg %p8567_p0 }
  0x22   : > { %p8575_p9 = pnand %p8574_p7, %p8568_p2 }
  0x24   : > { %8578 = shalt.err (!%p8575_p9)
}
  0x25   : > { %s8772_s19 = smov 128   ;;  %s8773_s20 = smov 8  }
  0x26   : > { %8463 = dma.hbm_to_vmem [thread:$0]  (!%p8855_p6), %s9628_s1, 512, %s8844_s26, [#allocation6], %s8772_s19, %s8772_s19, %s8773_s20  }
  0x27   : > { %s8579_s11 = scalar_lea.hbm %s9630_s3, 512 }
  0x28   : > { %p8580_p4 = scmp.ne.s32.totalorder %s9630_s3, %s8579_s11  ;;  %p8586_p12 = scmp.lt.u32.totalorder %s8579_s11, %s9630_s3 }
  0x2a   : > { %p8582_p10 = pnand %p8580_p4, %p8871_p8 }
  0x2c   : > { %p8583_p11 = pneg %p8582_p10 }
  0x2e   : > { %p8588_p13 = pnand %p8586_p12, %p8583_p11 }
  0x30   : > { %8591 = shalt.err (!%p8588_p13)
}
  0x31   : > { %s8592_s26 = scalar_lea.vmem %s8859_s30, 512  ;;  %p8600_p7 = scmp.lt.s32.totalorder %s8859_s30, %s8859_s30 }
  0x32   : > { %p8593_p0 = scmp.ne.s32.totalorder %s8859_s30, %s8592_s26  ;;  %p8601_p9 = scmp.lt.s32.totalorder %s8592_s26, %s8592_s26 }
  0x34   : > { %p8595_p2 = pnand %p8593_p0, %p8871_p8  ;;  %p8602_p4 = por %p8601_p9, %p8600_p7 }
  0x36   : > { %p8596_p5 = pneg %p8595_p2 }
  0x38   : > { %p8603_p10 = pnand %p8602_p4, %p8596_p5 }
  0x3a   : > { %8606 = shalt.err (!%p8603_p10)
}
  0x3b   : > { %8469 = dma.hbm_to_vmem [thread:$0]  (!%p8855_p6), %s9630_s3, 512, %s8859_s30, [#allocation9], %s8772_s19, %s8772_s19, %s8773_s20  }
  0x3c   : > { %s8607_s8 = scalar_lea.hbm %s9629_s2, 512 }
  0x3d   : > { %p8608_p11 = scmp.ne.s32.totalorder %s9629_s2, %s8607_s8  ;;  %p8614_p0 = scmp.lt.u32.totalorder %s8607_s8, %s9629_s2 }
  0x3f   : > { %p8610_p12 = pnand %p8608_p11, %p8871_p8 }
  0x41   : > { %p8611_p13 = pneg %p8610_p12 }
  0x43   : > { %p8616_p2 = pnand %p8614_p0, %p8611_p13 }
  0x45   : > { %8619 = shalt.err (!%p8616_p2)
}
  0x46   : > { %s8620_s30 = scalar_lea.vmem %s8861_s9, 512  ;;  %p8628_p4 = scmp.lt.s32.totalorder %s8861_s9, %s8861_s9 }
  0x47   : > { %p8621_p5 = scmp.ne.s32.totalorder %s8861_s9, %s8620_s30  ;;  %p8629_p10 = scmp.lt.s32.totalorder %s8620_s30, %s8620_s30 }
  0x49   : > { %p8623_p7 = pnand %p8621_p5, %p8871_p8  ;;  %p8630_p11 = por %p8629_p10, %p8628_p4 }
  0x4b   : > { %p8624_p9 = pneg %p8623_p7 }
  0x4d   : > { %p8631_p12 = pnand %p8630_p11, %p8624_p9 }
  0x4f   : > { %8634 = shalt.err (!%p8631_p12)
}
  0x50   : > { %8466 = dma.hbm_to_vmem [thread:$0]  (!%p8855_p6), %s9629_s2, 512, %s8861_s9, [#allocation6], %s8772_s19, %s8772_s19, %s8773_s20  }
  0x51   : > { %s8774_s26 = smov [#allocation10]   ;;  %s8635_s29 = scalar_lea.hbm %s9631_s4, 512 }
  0x52   : > { %s237_s17 = sshll.u32 %s8774_s26, 4  ;;  %p8636_p13 = scmp.ne.s32.totalorder %s9631_s4, %s8635_s29  ;;  %s238_s17 = int_to_ptr.vmem [resolvable:$true] %s237_s17 }
  0x53   : > { %p8642_p5 = scmp.lt.u32.totalorder %s8635_s29, %s9631_s4 }
  0x54   : > { %p8638_p0 = pnand %p8636_p13, %p8871_p8 }
  0x56   : > { %p8639_p2 = pneg %p8638_p0 }
  0x58   : > { %p8644_p7 = pnand %p8642_p5, %p8639_p2 }
  0x5a   : > { %8647 = shalt.err (!%p8644_p7)
}
  0x5b   : > { %s8648_s9 = scalar_lea.vmem %s238_s17, 512  ;;  %p8656_p11 = scmp.lt.s32.totalorder %s238_s17, %s238_s17 }
  0x5c   : > { %p8649_p9 = scmp.ne.s32.totalorder %s238_s17, %s8648_s9  ;;  %p8657_p12 = scmp.lt.s32.totalorder %s8648_s9, %s8648_s9 }
  0x5e   : > { %p8651_p4 = pnand %p8649_p9, %p8871_p8  ;;  %p8658_p1 = por %p8657_p12, %p8656_p11 }
  0x60   : > { %p8652_p10 = pneg %p8651_p4 }
  0x62   : > { %p8659_p3 = pnand %p8658_p1, %p8652_p10 }
  0x64   : > { %8662 = shalt.err (!%p8659_p3)
}
  0x65   : > { %8472 = dma.hbm_to_vmem [thread:$0]  (!%p8855_p6), %s9631_s4, 512, %s238_s17, [#allocation9], %s8772_s19, %s8772_s19, %s8773_s20  }
  0x66   : > { %s7409_s7 = sadd.s32 4294967294, %s8767_s24   ;;  %s8970_s15 = sadd.s32 1, %s8767_s24  }
  0x67   : > { %s28_s14 = ssub.s32 %s8767_s24, %s8970_s15  ;;  %s31_s16 = sadd.s32 1, %s8763_s23 }
  0x68   : > { %p29_p1 = scmp.eq.s32.totalorder %s28_s14, 0  ;;  %p38_p3 = scmp.ne.s32.totalorder %s8763_s23, %s8759_s22 }
  0x69   : > { %p39_p8 = scmp.eq.s32.totalorder %s8767_s24, 0  ;;  %p44_p13 = scmp.ne.s32.totalorder %s8759_s22, %s8755_s21 }
  0x6a   : > { %s8981_s26 = scalar_select %p29_p1, %s8763_s23, %s31_s16  }
  0x6b   : > { %p8983_p0 = por %p39_p8, %p38_p3  ;;  %p9641_p2 = scmp.eq.s32.totalorder %s8839_s27, 0 }
  0x6c   : > { %p173_p5 = scmp.eq.s32.totalorder %s8839_s27, 1  ;;  %p179_p7 = scmp.eq.s32.totalorder %s7409_s7, 1 }
  0x6d   : > { %p8989_p6 = por %p9641_p2, %p44_p13  ;;  %p8485_p9 = scmp.lt.s32.totalorder %s8767_s24, 2 }
  0x6e   : > { %s254_s20 = sand.u32 1, %s8763_s23   ;;  %p8996_p4 = por %p173_p5, %p38_p3 }
  0x6f   : > { %p9000_p10 = por %p179_p7, %p44_p13  ;;  %s7416_s29 = sshll.u32 %s254_s20, 3 }
  0x70   : > { %s9643_s17 = scalar_select %p8996_p4, 1, 0 }
  0x71   : > { %s9644_s25 = scalar_select %p9000_p10, 1, 0 }
  0x72   : > { %s7417_s8 = sshll.u32 %s8767_s24, 7  ;;  %s258_s9 = scalar_lea.vmem [#allocation2], %s7416_s29 }
  0x73   : > { %s9008_s12 = scalar_lea.hbm %s9627_s0, %s7417_s8  ;;  %s265_s13 = sshll.u32 %s258_s9, 4  ;;  %s9010_s13 = int_to_ptr.vmem [resolvable:$true] %s265_s13 }
  0x74   : > { %p9014_p11 = pnand %p8485_p9, %p8983_p0  ;;  %s255_s7 = scalar_lea.sflag [#allocation3], %s254_s20 }
  0x75   : > { %s8663_s14 = scalar_lea.hbm %s9008_s12, 128  ;;  %s8668_s8 = scalar_lea.hbm %s9627_s0, 256 }
  0x76   : > { %p8664_p12 = scmp.ne.s32.totalorder %s9008_s12, %s8663_s14  ;;  %p8665_p1 = pneg %p9014_p11 }
  0x77   : > { %p8669_p13 = scmp.lt.u32.totalorder %s9008_s12, %s9627_s0  ;;  %p8670_p0 = scmp.lt.u32.totalorder %s8668_s8, %s8663_s14 }
  0x78   : > { %p8666_p3 = pnand %p8665_p1, %p8664_p12  ;;  %p8672_p5 = scmp.lt.u32.totalorder %s8663_s14, %s9008_s12 }
  0x79   : > { %p8671_p2 = por %p8670_p0, %p8669_p13 }
  0x7a   : > { %p8667_p8 = pneg %p8666_p3 }
  0x7b   : > { %p8673_p7 = por %p8672_p5, %p8671_p2 }
  0x7d   : > { %p8674_p9 = pnand %p8673_p7, %p8667_p8 }
  0x7f   : > { %8677 = shalt.err (!%p8674_p9)
}
  0x80   : > { %s8678_s20 = scalar_lea.vmem %s9010_s13, 128  ;;  %s8775_s11 = smov [#allocation2]  }
  0x81   : > { %p8679_p12 = scmp.ne.s32.totalorder %s9010_s13, %s8678_s20  ;;  %s8683_s9 = sshll.u32 %s8775_s11, 4  ;;  %s8684_s9 = int_to_ptr.vmem [resolvable:$false] %s8683_s9 }
  0x82   : > { %s8685_s16 = scalar_lea.vmem %s8684_s9, 256  ;;  %p8686_p4 = scmp.lt.s32.totalorder %s9010_s13, %s8684_s9 }
  0x83   : > { %p8681_p3 = pnand %p8679_p12, %p8665_p1  ;;  %p8687_p13 = scmp.lt.s32.totalorder %s8685_s16, %s8678_s20 }
  0x85   : > { %p8682_p10 = pneg %p8681_p3  ;;  %p8688_p0 = por %p8687_p13, %p8686_p4 }
  0x87   : > { %p8689_p2 = pnand %p8688_p0, %p8682_p10 }
  0x89   : > { %8692 = shalt.err (!%p8689_p2)
}
  0x8a   : > { %8476 = dma.hbm_to_vmem [thread:$0]  (!%p9014_p11), %s9008_s12, 128, %s9010_s13, %s255_s7  }
  0x8b   : > { %p9646_p8 = scmp.ne.s32.totalorder %s9637_s28, 0 }
  0x8c   : > { %s9046_s14 = sand.u32 (!%p9646_p8), 1, %s8759_s22  }
  0x8d   : > { %274 = sbr.rel (%p9646_p8) target bundleno = 2897 (0xb51), region = 44  ;;  %s7419_s29 = sshll.u32 (!%p9646_p8), %s9046_s14, 3 }
  0x8e   : > { %s277_s8 = scalar_lea.sflag (!%p9646_p8), [#allocation3], %s9046_s14  ;;  %s280_s18 = scalar_lea.vmem (!%p9646_p8), [#allocation2], %s7419_s29 }
  0x94   : > { %8738 = dma.done.wait (%p8989_p6), %s277_s8, 128  }
  0x95   : > { %8740 = vsyncadd (%p8989_p6), %s277_s8, 4294967168  ;;  %p9647_p4 = scmp.eq.s32.totalorder %s8839_s27, 0 }
  0x97   : > { %8742 = dma.done.wait (%p9647_p4), [#allocation6], 1024   ;;  %p9648_p10 = pmov %p9647_p4 }
  0x98   : > { %p9649_p11 = pmov %p9647_p4 }
  0x99   : > { %8744 = vsyncadd (%p9648_p10), [#allocation6], 4294966272 }
  0x9a   : > { %8746 = dma.done.wait (%p9649_p11), [#allocation9], 1024   ;;  %p9650_p1 = pmov %p9647_p4 }
  0x9b   : > { %v8776_v0 = vmov 0.0|0.0   ;;  %vm8777_vm0 = vmmov 0   ;;  %v8778_v1 = vmov 0.0   ;;  %v326_v2 = vld [vmem:[#allocation5] sm:$0xff]  ;;  %v327_v3 = vld [vmem:[#allocation5 + $0x8] sm:$0xff]  ;;  %vm330_vm1 = vcmask 261120  }
  0x9c   : > { %8748 = vsyncadd (%p9650_p1), [#allocation9], 4294966272  ;;  %8222 = vmatprep.subr.bf16.mxu0 %v8776_v0  ;;  %8258 = vmatprep.subr.bf16.mxu1 %v8776_v0  ;;  %v820_v4 = vld [vmem:[#allocation7] sm:$0xff]  ;;  %v335_v5 = vand.u32 4294901760, %v326_v2  ;;  %v338_v6 = vand.u32 4294901760, %v327_v3  ;;  %v821_v7 = vld [vmem:[#allocation7 + $0x8] sm:$0xff] }
  0x9d   : > { %7672 = vmatprep.mubr.msk.f32.mxu0 %vm8777_vm0, %v8778_v1  ;;  %7738 = vmatprep.mubr.msk.f32.mxu1 %vm8777_vm0, %v8778_v1  ;;  %v825_v8 = vand.u32 4294901760, %v820_v4  ;;  %v328_v9 = vld [vmem:[#allocation5 + $0x10] sm:$0xff]  ;;  %v329_v10 = vld [vmem:[#allocation5 + $0x18] sm:$0xff]  ;;  %v828_v11 = vand.u32 4294901760, %v821_v7  ;;  %vm1807_vm2 = vcmask 64512   ;;  %s8779_s28 = smov 120  }
  0x9e   : > { %v341_v12 = vand.u32 4294901760, %v328_v9  ;;  %v344_v13 = vand.u32 4294901760, %v329_v10  ;;  %v822_v14 = vld [vmem:[#allocation7 + $0x10] sm:$0xff]  ;;  %v823_v15 = vld [vmem:[#allocation7 + $0x18] sm:$0xff]  ;;  %v9070_v17 = vpack.c.bf16 %v338_v6, %v335_v5  ;;  %v9072_v18 = vsub.f32 %v326_v2, %v335_v5  ;;  %s8780_s19 = smov 112   ;;  %s8781_s12 = smov 104  }
  0x9f   : > { %v325_v16 = vld [vmem:[%s280_s18] sm:$0xff]  ;;  %v9074_v19 = vsub.f32 %v327_v3, %v338_v6  ;;  %v9076_v20 = vsub.f32 %v820_v4, %v825_v8  ;;  %v9078_v21 = vpack.c.bf16 %v828_v11, %v825_v8  ;;  %v9080_v22 = vsub.f32 %v821_v7, %v828_v11  ;;  %v1309_v11 = vld [vmem:[#allocation8] sm:$0xff]  ;;  %s7427_s7 = sshll.u32 %s8839_s27, 7  ;;  %s324_s10 = scalar_lea.vmem [#allocation11], %s7419_s29 }
  0xa0   : > { %v9082_v23 = vpack.c.bf16 %v344_v13, %v341_v12  ;;  %v9084_v24 = vsub.f32 %v328_v9, %v341_v12  ;;  %8224 = vmatpush3.bf16.msra.mxu0 %v9070_v17  ;;  %v9087_v25 = vsub.f32 %v329_v10, %v344_v13  ;;  %v831_v26 = vand.u32 4294901760, %v822_v14  ;;  %v1310_v12 = vld [vmem:[#allocation8 + $0x8] sm:$0xff]  ;;  %s7301_s20 = sshll.u32 %s324_s10, 4  ;;  %s9582_s16 = scalar_lea.hbm %s9633_s6, %s7427_s7  ;;  %s9584_s20 = int_to_ptr.vmem [resolvable:$true] %s7301_s20 }
  0xa1   : > { %v834_v27 = vand.u32 4294901760, %v823_v15  ;;  %v332_v28 = vsel %vm330_vm1, %v325_v16, 0  ;;  %8260 = vmatpush3.bf16.msra.mxu1 %v9078_v21  ;;  %8225 = vmatprep.subr.bf16.mxu0 %v8776_v0  ;;  %v416_v30 = vand.u32 4294901760, %v9072_v18  ;;  %v423_v31 = vand.u32 4294901760, %v9074_v19  ;;  %s7288_s8 = scalar_lea.sflag [#allocation4], %s9046_s14  ;;  %s8693_s27 = scalar_lea.vmem %s9584_s20, 128 }
  0xa2   : > { %v9092_v29 = vand.u32 4294901760, %v332_v28  ;;  %v906_v32 = vand.u32 4294901760, %v9076_v20  ;;  %8261 = vmatprep.subr.bf16.mxu1 %v8776_v0  ;;  %v9100_v34 = vsub.f32 %v822_v14, %v831_v26  ;;  %v913_v36 = vand.u32 4294901760, %v9080_v22  ;;  %p8694_p6 = scmp.ne.s32.totalorder %s9584_s20, %s8693_s27  ;;  %p9651_p5 = scmp.ne.s32.totalorder %s9643_s17, 0 }
  0xa3   : > { %v9098_v33 = vpack.c.bf16 %v834_v27, %v831_v26  ;;  %v9102_v35 = vsub.f32 %v823_v15, %v834_v27  ;;  %v417_v38 = vsub.f32 %v9072_v18, %v416_v30  ;;  %v424_v39 = vsub.f32 %v9074_v19, %v423_v31  ;;  %s8782_s29 = smov [#allocation11]  }
  0xa4   : > { %v9106_v37 = vsub.f32 %v332_v28, %v9092_v29  ;;  %v907_v40 = vsub.f32 %v9076_v20, %v906_v32  ;;  %8227 = vmatpush3.bf16.msra.mxu0 %v9082_v23  ;;  %v914_v41 = vsub.f32 %v9080_v22, %v913_v36  ;;  %v430_v42 = vand.u32 4294901760, %v9084_v24  ;;  %p8695_p7 = pnand %p8694_p6, %p9651_p5  ;;  %s8697_s18 = sshll.u32 %s8782_s29, 4  ;;  %s8698_s18 = int_to_ptr.vmem [resolvable:$false] %s8697_s18 }
  0xa5   : > { %v437_v43 = vand.u32 4294901760, %v9087_v25  ;;  %v920_v44 = vand.u32 4294901760, %v9100_v34  ;;  %8263 = vmatpush3.bf16.msra.mxu1 %v9098_v33  ;;  %8228 = vmatprep.subr.bf16.mxu0 %v8776_v0  ;;  %v418_v46 = vand.u32 4294901760, %v417_v38  ;;  %v425_v47 = vand.u32 4294901760, %v424_v39  ;;  %p8700_p12 = scmp.lt.s32.totalorder %s9584_s20, %s8698_s18 }
  0xa6   : > { %v9126_v45 = vand.u32 4294901760, %v9106_v37  ;;  %v908_v48 = vand.u32 4294901760, %v907_v40  ;;  %8264 = vmatprep.subr.bf16.mxu1 %v8776_v0  ;;  %v915_v49 = vand.u32 4294901760, %v914_v41  ;;  %v431_v50 = vsub.f32 %v9084_v24, %v430_v42  ;;  %p8696_p9 = pneg %p8695_p7 }
  0xa7   : > { %v438_v51 = vsub.f32 %v9087_v25, %v437_v43  ;;  %v921_v52 = vsub.f32 %v9100_v34, %v920_v44  ;;  %v927_v54 = vand.u32 4294901760, %v9102_v35  ;;  %v8229_v55 = vpack.c.bf16 %v425_v47, %v418_v46 }
  0xa8   : > { %v406_v53 = vsub.f32 %v9106_v37, %v9126_v45  ;;  %v8265_v56 = vpack.c.bf16 %v915_v49, %v908_v48  ;;  %v432_v57 = vand.u32 4294901760, %v431_v50  ;;  %v8235_v3 = vpack.c.bf16 %v9074_v19, %v9072_v18  ;;  %v1311_v18 = vld [vmem:[#allocation8 + $0x10] sm:$0xff]  ;;  %v1312_v19 = vld [vmem:[#allocation8 + $0x18] sm:$0xff] }
  0xa9   : > { %v439_v58 = vand.u32 4294901760, %v438_v51  ;;  %v922_v60 = vand.u32 4294901760, %v921_v52  ;;  %v928_v61 = vsub.f32 %v9102_v35, %v927_v54  ;;  %v8271_v4 = vpack.c.bf16 %v9080_v22, %v9076_v20 }
  0xaa   : > { %v9142_v59 = vand.u32 4294901760, %v406_v53  ;;  %v8238_v5 = vpack.c.bf16 %v9087_v25, %v9084_v24  ;;  %v8274_v6 = vpack.c.bf16 %v9102_v35, %v9100_v34  ;;  %v8247_v7 = vpack.c.bf16 %v423_v31, %v416_v30 }
  0xab   : > { %v929_v62 = vand.u32 4294901760, %v928_v61  ;;  %v8232_v63 = vpack.c.bf16 %v439_v58, %v432_v57  ;;  %v8283_v8 = vpack.c.bf16 %v913_v36, %v906_v32  ;;  %v8250_v9 = vpack.c.bf16 %v437_v43, %v430_v42 }
  0xac   : > { %7673 = vmatmul.mubr.f32.vlgmr.msra.gmra.mrb[0].mxu0 %v9142_v59  ;;  %7739 = vmatmul.mubr.f32.vlgmr.msra.gmra.mrb[0].mxu1 %v9142_v59  ;;  %v8286_v10 = vpack.c.bf16 %v927_v54, %v920_v44  ;;  %v1314_v13 = vand.u32 4294901760, %v1309_v11  ;;  %v1317_v14 = vand.u32 4294901760, %v1310_v12  ;;  %v1320_v20 = vand.u32 4294901760, %v1311_v18 }
  0xad   : > { %8230 = vmatpush3.bf16.msra.mxu0 %v8229_v55  ;;  %8266 = vmatpush3.bf16.msra.mxu1 %v8265_v56  ;;  %v8268_v2 = vpack.c.bf16 %v929_v62, %v922_v60 }
  0xae   : > { %8231 = vmatprep.subr.bf16.mxu0 %v8776_v0  ;;  %8267 = vmatprep.subr.bf16.mxu1 %v8776_v0  ;;  %v8295_v15 = vpack.c.bf16 %v1317_v14, %v1314_v13  ;;  %v1394_v16 = vsub.f32 %v1309_v11, %v1314_v13  ;;  %v1408_v25 = vsub.f32 %v1311_v18, %v1320_v20 }
  0xaf   : > { %7683 = vmatprep.mubr.msk.f32.mxu0 %vm8777_vm0, %v8778_v1  ;;  %7749 = vmatprep.mubr.msk.f32.mxu1 %vm8777_vm0, %v8778_v1 }
  0xb0   : > { %v1395_v22 = vand.u32 4294901760, %v1394_v16  ;;  %v1409_v31 = vand.u32 4294901760, %v1408_v25 }
  0xb1   : > { %8233 = vmatpush3.bf16.msra.mxu0 %v8232_v63  ;;  %8269 = vmatpush3.bf16.msra.mxu1 %v8268_v2 }
  0xb2   : > { %8234 = vmatprep.subr.bf16.mxu0 %v8776_v0  ;;  %8270 = vmatprep.subr.bf16.mxu1 %v8776_v0  ;;  %v1396_v27 = vsub.f32 %v1394_v16, %v1395_v22  ;;  %v1410_v34 = vsub.f32 %v1408_v25, %v1409_v31 }
  0xb4   : > { %7684 = vmatmul.mubr.f32.vlgmr.msra.gmra.mrb[0].mxu0 %v9092_v29  ;;  %7750 = vmatmul.mubr.f32.vlgmr.msra.gmra.mrb[0].mxu1 %v9092_v29  ;;  %v1397_v30 = vand.u32 4294901760, %v1396_v27  ;;  %v1411_v38 = vand.u32 4294901760, %v1410_v34 }
  0xb5   : > { %8236 = vmatpush3.bf16.msra.mxu0 %v8235_v3  ;;  %8272 = vmatpush3.bf16.msra.mxu1 %v8271_v4 }
  0xb6   : > { %8237 = vmatprep.subr.bf16.mxu0 %v8776_v0  ;;  %8273 = vmatprep.subr.bf16.mxu1 %v8776_v0 }
  0xb7   : > { %7694 = vmatprep.mubr.msk.f32.mxu0 %vm8777_vm0, %v8778_v1  ;;  %7760 = vmatprep.mubr.msk.f32.mxu1 %vm8777_vm0, %v8778_v1 }
  0xb9   : > { %8239 = vmatpush3.bf16.msra.mxu0 %v8238_v5  ;;  %8275 = vmatpush3.bf16.msra.mxu1 %v8274_v6 }
  0xba   : > { %8240 = vmatprep.subr.bf16.mxu0 %v8776_v0  ;;  %8276 = vmatprep.subr.bf16.mxu1 %v8776_v0 }
  0xbc   : > { %7695 = vmatmul.mubr.f32.vlgmr.msra.gmra.mrb[0].mxu0 %v9106_v37  ;;  %7761 = vmatmul.mubr.f32.vlgmr.msra.gmra.mrb[0].mxu1 %v9106_v37 }
  0xbd   : > { %8242 = vmatpush3.bf16.msra.mxu0 %v9070_v17  ;;  %8278 = vmatpush3.bf16.msra.mxu1 %v9078_v21 }
  0xbe   : > { %8243 = vmatprep.subr.bf16.mxu0 %v8776_v0  ;;  %8279 = vmatprep.subr.bf16.mxu1 %v8776_v0 }
  0xbf   : > { %7705 = vmatprep.mubr.msk.f32.mxu0 %vm8777_vm0, %v8778_v1  ;;  %7771 = vmatprep.mubr.msk.f32.mxu1 %vm8777_vm0, %v8778_v1 }
  0xc1   : > { %8245 = vmatpush3.bf16.msra.mxu0 %v9082_v23  ;;  %8281 = vmatpush3.bf16.msra.mxu1 %v9098_v33 }
  0xc2   : > { %8246 = vmatprep.subr.bf16.mxu0 %v8776_v0  ;;  %8282 = vmatprep.subr.bf16.mxu1 %v8776_v0 }
  0xc4   : > { %7706 = vmatmul.mubr.f32.vlgmr.msra.gmra.mrb[0].mxu0 %v9126_v45  ;;  %7772 = vmatmul.mubr.f32.vlgmr.msra.gmra.mrb[0].mxu1 %v9126_v45 }
  0xc5   : > { %8248 = vmatpush3.bf16.msra.mxu0 %v8247_v7  ;;  %8284 = vmatpush3.bf16.msra.mxu1 %v8283_v8 }
  0xc6   : > { %8249 = vmatprep.subr.bf16.mxu0 %v8776_v0  ;;  %8285 = vmatprep.subr.bf16.mxu1 %v8776_v0 }
  0xc7   : > { %7716 = vmatprep.mubr.msk.f32.mxu0 %vm8777_vm0, %v8778_v1  ;;  %7782 = vmatprep.mubr.msk.f32.mxu1 %vm8777_vm0, %v8778_v1 }
  0xc9   : > { %8251 = vmatpush3.bf16.msra.mxu0 %v8250_v9  ;;  %8287 = vmatpush3.bf16.msra.mxu1 %v8286_v10 }
  0xca   : > { %8252 = vmatprep.subr.bf16.mxu0 %v8776_v0  ;;  %8288 = vmatprep.subr.bf16.mxu1 %v8776_v0 }
  0xcc   : > { %7717 = vmatmul.mubr.f32.vlgmr.msra.gmra.mrb[0].mxu0 %v9092_v29  ;;  %7783 = vmatmul.mubr.f32.vlgmr.msra.gmra.mrb[0].mxu1 %v9092_v29 }
  0xcd   : > { %8254 = vmatpush3.bf16.msra.mxu0 %v9070_v17  ;;  %8290 = vmatpush3.bf16.msra.mxu1 %v9078_v21  ;;  %v1401_v17 = vsub.f32 %v1310_v12, %v1317_v14  ;;  %v1323_v21 = vand.u32 4294901760, %v1312_v19  ;;  %v1798_v14 = vlaneseq }
  0xce   : > { %8255 = vmatprep.subr.bf16.mxu0 %v8776_v0  ;;  %8291 = vmatprep.subr.bf16.mxu1 %v8776_v0 }
  0xcf   : > { %7727 = vmatprep.mubr.msk.f32.mxu0 %vm8777_vm0, %v8778_v1  ;;  %7793 = vmatprep.mubr.msk.f32.mxu1 %vm8777_vm0, %v8778_v1  ;;  %v8298_v24 = vpack.c.bf16 %v1323_v21, %v1320_v20  ;;  %v1415_v26 = vsub.f32 %v1312_v19, %v1323_v21  ;;  %v8307_v41 = vpack.c.bf16 %v1401_v17, %v1394_v16  ;;  %v9319_v16 = vand.u32 127, %v1798_v14 }
  0xd1   : > { %8257 = vmatpush3.bf16.msra.mxu0 %v9082_v23  ;;  %8293 = vmatpush3.bf16.msra.mxu1 %v9098_v33  ;;  %v1402_v23 = vand.u32 4294901760, %v1401_v17  ;;  %v1416_v32 = vand.u32 4294901760, %v1415_v26  ;;  %v8310_v42 = vpack.c.bf16 %v1415_v26, %v1408_v25 }
  0xd2   : > { %7862 = vmatprep.subr.mxu1 %v8778_v1  ;;  %8294 = vmatprep.subr.bf16.mxu0 %v8776_v0 }
  0xd3   : > { %v1403_v28 = vsub.f32 %v1401_v17, %v1402_v23  ;;  %v1417_v35 = vsub.f32 %v1415_v26, %v1416_v32  ;;  %v8319_v43 = vpack.c.bf16 %v1402_v23, %v1395_v22  ;;  %v8322_v44 = vpack.c.bf16 %v1416_v32, %v1409_v31 }
  0xd4   : > { %7728 = vmatmul.mubr.f32.vlgmr.msra.gmra.mrb[0].mxu0 %v9092_v29  ;;  %7794 = vmatmul.mubr.f32.vlgmr.msra.gmra.mrb[0].mxu1 %v9092_v29 }
  0xd5   : > { %7864 = vmatprep.mubr.msk.f32.mxu1 %vm8777_vm0, %v8778_v1  ;;  %7804 = vmatprep.mubr.msk.f32.mxu0 %vm8777_vm0, %v8778_v1  ;;  %v1404_v33 = vand.u32 4294901760, %v1403_v28  ;;  %v1418_v39 = vand.u32 4294901760, %v1417_v35 }
  0xd6   : > { %8296 = vmatpush3.bf16.msra.mxu0 %v8295_v15 }
  0xd7   : > { %8297 = vmatprep.subr.bf16.mxu0 %v8776_v0  ;;  %v8301_v36 = vpack.c.bf16 %v1404_v33, %v1397_v30  ;;  %v8304_v40 = vpack.c.bf16 %v1418_v39, %v1411_v38 }
  0xda   : > { %8299 = vmatpush3.bf16.msra.mxu0 %v8298_v24 }
  0xdb   : > { %8300 = vmatprep.subr.bf16.mxu0 %v8776_v0 }
  0xdd   : > { %7805 = vmatmul.mubr.f32.vlgmr.msra.gmra.mrb[2].mxu0 %v9142_v59 }
  0xde   : > { %7815 = vmatprep.mubr.msk.f32.mxu0 %vm8777_vm0, %v8778_v1  ;;  %8302 = vmatpush3.bf16.msra.mxu0 %v8301_v36 }
  0xdf   : > { %8303 = vmatprep.subr.bf16.mxu0 %v8776_v0 }
  0xe2   : > { %8305 = vmatpush3.bf16.msra.mxu0 %v8304_v40 }
  0xe3   : > { %8306 = vmatprep.subr.bf16.mxu0 %v8776_v0 }
  0xe5   : > { %7816 = vmatmul.mubr.f32.vlgmr.msra.gmra.mrb[2].mxu0 %v9092_v29 }
  0xe6   : > { %8308 = vmatpush3.bf16.msra.mxu0 %v8307_v41  ;;  %7826 = vmatprep.mubr.msk.f32.mxu0 %vm8777_vm0, %v8778_v1 }
  0xe7   : > { %8309 = vmatprep.subr.bf16.mxu0 %v8776_v0 }
  0xea   : > { %8311 = vmatpush3.bf16.msra.mxu0 %v8310_v42 }
  0xeb   : > { %8312 = vmatprep.subr.bf16.mxu0 %v8776_v0 }
  0xed   : > { %7827 = vmatmul.mubr.f32.vlgmr.msra.gmra.mrb[2].mxu0 %v9106_v37 }
  0xee   : > { %8314 = vmatpush3.bf16.msra.mxu0 %v8295_v15  ;;  %7837 = vmatprep.mubr.msk.f32.mxu0 %vm8777_vm0, %v8778_v1 }
  0xef   : > { %8315 = vmatprep.subr.bf16.mxu0 %v8776_v0 }
  0xf2   : > { %8317 = vmatpush3.bf16.msra.mxu0 %v8298_v24 }
  0xf3   : > { %8318 = vmatprep.subr.bf16.mxu0 %v8776_v0 }
  0xf5   : > { %7838 = vmatmul.mubr.f32.vlgmr.msra.gmra.mrb[2].mxu0 %v9126_v45 }
  0xf6   : > { %8320 = vmatpush3.bf16.msra.mxu0 %v8319_v43  ;;  %7848 = vmatprep.mubr.msk.f32.mxu0 %vm8777_vm0, %v8778_v1 }
  0xf7   : > { %8321 = vmatprep.subr.bf16.mxu0 %v8776_v0 }
  0xfa   : > { %8323 = vmatpush3.bf16.msra.mxu0 %v8322_v44 }
  0xfb   : > { %8324 = vmatprep.subr.bf16.mxu0 %v8776_v0 }
  0xfd   : > { %7849 = vmatmul.mubr.f32.vlgmr.msra.gmra.mrb[2].mxu0 %v9092_v29 }
  0xfe   : > { %8326 = vmatpush3.bf16.msra.mxu0 %v8295_v15  ;;  %7859 = vmatprep.mubr.msk.f32.mxu0 %vm8777_vm0, %v8778_v1  ;;  %v9317_v15 = vshrl.u32 %v1798_v14, 7 }
  0xff   : > { %8327 = vmatprep.subr.bf16.mxu0 %v8776_v0 }
 0x100   : > { %vm1802_vm3 = vcmp.ge.s32.totalorder %v9317_v15, %v9319_v16 }
 0x102   : > { %8329 = vmatpush3.bf16.msra.mxu0 %v8298_v24 }
 0x103   : > { %7922 = vmatprep.subr.mxu0 %v8778_v1 }
 0x105   : > { %7860 = vmatmul.mubr.f32.vlgmr.msra.gmra.mrb[2].mxu0 %v9092_v29 }
 0x106   : > { %7924 = vmatprep.mubr.msk.f32.mxu0 %vm8777_vm0, %v8778_v1 }
 0x1a7   : > { %v815_v37 = vpop.f32.mrb[0].mxu0  ;;  %v9261_v45 = vpop.f32.mrb[0].mxu1 }
 0x1a8   : > { %v9263_v46 = vmul.f32 0.35355338, %v815_v37  ;;  %v1812_v47 = vsel %vm1807_vm2, %v9261_v45, 0  ;;  %v7729_v48 = vpop.f32.mrb[1].mxu0  ;;  %v7795_v49 = vpop.f32.mrb[1].mxu1 }
 0x1a9   : > { %v1815_v0 = vand.u32 4294901760, %v1812_v47 }
 0x1aa   : > { %v1809_v50 = vsel %vm1807_vm2, %v9263_v46, 0  ;;  %2722 = vrot.lane.b32.xlu0 %v9263_v46, %s8779_s28 }
 0x1ab   : > { %v1880_v29 = vand.u32 4294901760, %v1809_v50  ;;  %v1892_v51 = vsub.f32 %v1812_v47, %v1815_v0  ;;  %7863 = vmatpush3.xpose.msra.mxu1 %v1815_v0 }
 0x1ac   : > { %7867 = vmatprep.subr.mxu1 %v8778_v1 }
 0x1ad   : > { %v1881_v52 = vsub.f32 %v1809_v50, %v1880_v29  ;;  %v1893_v53 = vand.u32 4294901760, %v1892_v51 }
 0x1ae   : > { %2724 = vrot.lane.b32.xlu0 %v9261_v45, %s8779_s28 }
 0x1af   : > { %v1882_v54 = vand.u32 4294901760, %v1881_v52  ;;  %v1894_v55 = vsub.f32 %v1892_v51, %v1893_v53 }
 0x1b1   : > { %v1883_v56 = vsub.f32 %v1881_v52, %v1882_v54  ;;  %v1895_v58 = vand.u32 4294901760, %v1894_v55 }
 0x1b3   : > { %v1884_v57 = vand.u32 4294901760, %v1883_v56 }
 0x1b5   : > { %7865 = vmatmul.mubr.f32.vlgmr.msra.gmra.mrb[2].mxu1 %v1884_v57 }
 0x1b6   : > { %7868 = vmatpush3.xpose.msra.mxu1 %v1895_v58  ;;  %7869 = vmatprep.mubr.msk.f32.mxu1 %vm8777_vm0, %v8778_v1  ;;  %v1804_v58 = vld [vmem:[#allocation10 + $0x8] sm:$0xff] }
 0x1b7   : > { %7872 = vmatprep.subr.mxu1 %v8778_v1 }
 0x1bd   : > { %7870 = vmatmul.mubr.f32.vlgmr.msra.gmra.mrb[2].mxu1 %v1880_v29 }
 0x1be   : > { %7873 = vmatpush3.xpose.msra.mxu1 %v1892_v51  ;;  %7874 = vmatprep.mubr.msk.f32.mxu1 %vm8777_vm0, %v8778_v1 }
 0x1bf   : > { %7877 = vmatprep.subr.mxu1 %v8778_v1 }
 0x1c5   : > { %7875 = vmatmul.mubr.f32.vlgmr.msra.gmra.mrb[2].mxu1 %v1881_v52 }
 0x1c6   : > { %7878 = vmatpush3.xpose.msra.mxu1 %v1815_v0  ;;  %7879 = vmatprep.mubr.msk.f32.mxu1 %vm8777_vm0, %v8778_v1 }
 0x1c7   : > { %7882 = vmatprep.subr.mxu1 %v8778_v1 }
 0x1cd   : > { %7880 = vmatmul.mubr.f32.vlgmr.msra.gmra.mrb[2].mxu1 %v1882_v54 }
 0x1ce   : > { %7883 = vmatpush3.xpose.msra.mxu1 %v1893_v53  ;;  %7884 = vmatprep.mubr.msk.f32.mxu1 %vm8777_vm0, %v8778_v1 }
 0x1cf   : > { %7887 = vmatprep.subr.mxu1 %v8778_v1 }
 0x1d5   : > { %7885 = vmatmul.mubr.f32.vlgmr.msra.gmra.mrb[2].mxu1 %v1880_v29 }
 0x1d6   : > { %7888 = vmatpush3.xpose.msra.mxu1 %v1815_v0  ;;  %7889 = vmatprep.mubr.msk.f32.mxu1 %vm8777_vm0, %v8778_v1 }
 0x1d7   : > { %7892 = vmatprep.subr.mxu1 %v8778_v1 }
 0x1d8   : > { %v9308_v11 = vpop.f32.mrb[2].mxu0 }
 0x1d9   : > { %3189 = vrot.lane.b32.xlu0 %v9308_v11, %s8779_s28  ;;  %v7861_v12 = vpop.f32.mrb[3].mxu0  ;;  %v2276_v13 = vand.u32 4294901760, %v9308_v11  ;;  %s8699_s28 = scalar_lea.vmem %s8698_s18, 256 }
 0x1da   : > { %p8701_p3 = scmp.lt.s32.totalorder %s8699_s28, %s8693_s27 }
 0x1db   : > { %v2353_v28 = vsub.f32 %v9308_v11, %v2276_v13 }
 0x1dc   : > { %p8702_p13 = por %p8701_p3, %p8700_p12 }
 0x1dd   : > { %7890 = vmatmul.mubr.f32.vlgmr.msra.gmra.mrb[2].mxu1 %v1880_v29  ;;  %v2354_v34 = vand.u32 4294901760, %v2353_v28 }
 0x1de   : > { %7894 = vmatprep.mubr.msk.f32.mxu1 %vm8777_vm0, %v8778_v1  ;;  %7893 = vmatpush3.msra.mxu1 %v2276_v13  ;;  %p8703_p0 = pnand %p8702_p13, %p8696_p9 }
 0x1df   : > { %7897 = vmatprep.subr.mxu1 %v8778_v1  ;;  %v2355_v38 = vsub.f32 %v2353_v28, %v2354_v34 }
 0x1e1   : > { %v2356_v41 = vand.u32 4294901760, %v2355_v38 }
 0x21c   : > { %v2723_v59 = vpop.permute.xlu0 %2722 }
 0x21d   : > { %v2726_v60 = vsel %vm1807_vm2, %v2723_v59, 0  ;;  %v3646_v59 = vand.u32 4294901760, %v1804_v58 }
 0x21e   : > { %v2796_v61 = vand.u32 4294901760, %v2726_v60 }
 0x220   : > { %v2797_v62 = vsub.f32 %v2726_v60, %v2796_v61  ;;  %v2725_v63 = vpop.permute.xlu0 %2724  ;;  %v3723_v60 = vsub.f32 %v1804_v58, %v3646_v59 }
 0x221   : > { %v2728_v2 = vsel %vm1807_vm2, %v2725_v63, 0 }
 0x222   : > { %v2798_v3 = vand.u32 4294901760, %v2797_v62  ;;  %v2731_v4 = vand.u32 4294901760, %v2728_v2 }
 0x224   : > { %v2799_v5 = vsub.f32 %v2797_v62, %v2798_v3  ;;  %v2808_v6 = vsub.f32 %v2728_v2, %v2731_v4  ;;  %7923 = vmatpush3.xpose.msra.mxu0 %v2731_v4 }
 0x225   : > { %7927 = vmatprep.subr.mxu0 %v8778_v1 }
 0x226   : > { %v2800_v7 = vand.u32 4294901760, %v2799_v5  ;;  %v2809_v8 = vand.u32 4294901760, %v2808_v6 }
 0x228   : > { %v2810_v9 = vsub.f32 %v2808_v6, %v2809_v8  ;;  %7925 = vmatmul.mubr.f32.vlgmr.msra.gmra.mrb[4].mxu0 %v2800_v7 }
 0x229   : > { %7929 = vmatprep.mubr.msk.f32.mxu0 %vm8777_vm0, %v8778_v1 }
 0x22a   : > { %v2811_v10 = vand.u32 4294901760, %v2810_v9 }
 0x22c   : > { %7928 = vmatpush3.xpose.msra.mxu0 %v2811_v10 }
 0x22d   : > { %7932 = vmatprep.subr.mxu0 %v8778_v1 }
 0x230   : > { %7930 = vmatmul.mubr.f32.vlgmr.msra.gmra.mrb[4].mxu0 %v2796_v61 }
 0x231   : > { %7933 = vmatpush3.xpose.msra.mxu0 %v2808_v6  ;;  %7934 = vmatprep.mubr.msk.f32.mxu0 %vm8777_vm0, %v8778_v1  ;;  %v1803_v6 = vld [vmem:[#allocation10] sm:$0xff] }
 0x232   : > { %7937 = vmatprep.subr.mxu0 %v8778_v1  ;;  %v4095_v7 = vand.u32 4294901760, %v1803_v6 }
 0x234   : > { %v9379_v12 = vsub.f32 %v1803_v6, %v4095_v7 }
 0x238   : > { %7935 = vmatmul.mubr.f32.vlgmr.msra.gmra.mrb[4].mxu0 %v2797_v62 }
 0x239   : > { %7938 = vmatpush3.xpose.msra.mxu0 %v2731_v4  ;;  %7939 = vmatprep.mubr.msk.f32.mxu0 %vm8777_vm0, %v8778_v1 }
 0x23a   : > { %7942 = vmatprep.subr.mxu0 %v8778_v1 }
 0x240   : > { %7940 = vmatmul.mubr.f32.vlgmr.msra.gmra.mrb[4].mxu0 %v2798_v3 }
 0x241   : > { %7943 = vmatpush3.xpose.msra.mxu0 %v2809_v8  ;;  %7944 = vmatprep.mubr.msk.f32.mxu0 %vm8777_vm0, %v8778_v1 }
 0x242   : > { %7947 = vmatprep.subr.mxu0 %v8778_v1 }
 0x248   : > { %7945 = vmatmul.mubr.f32.vlgmr.msra.gmra.mrb[4].mxu0 %v2796_v61 }
 0x249   : > { %7948 = vmatpush3.xpose.msra.mxu0 %v2731_v4  ;;  %7949 = vmatprep.mubr.msk.f32.mxu0 %vm8777_vm0, %v8778_v1 }
 0x24a   : > { %7982 = vmatprep.subr.mxu0 %v8778_v1 }
 0x24b   : > { %v3190_v42 = vpop.permute.xlu0 %3189 }
 0x24c   : > { %v3196_v43 = vand.u32 4294901760, %v3190_v42 }
 0x24e   : > { %v3273_v48 = vsub.f32 %v3190_v42, %v3196_v43 }
 0x250   : > { %7950 = vmatmul.mubr.f32.vlgmr.msra.gmra.mrb[4].mxu0 %v2796_v61  ;;  %v3274_v51 = vand.u32 4294901760, %v3273_v48  ;;  %v3724_v61 = vand.u32 4294901760, %v3723_v60 }
 0x251   : > { %7984 = vmatprep.mubr.msk.f32.mxu0 %vm8777_vm0, %v8778_v1  ;;  %7983 = vmatpush3.msra.mxu0 %v3646_v59 }
 0x252   : > { %v3275_v54 = vsub.f32 %v3273_v48, %v3274_v51  ;;  %7992 = vmatprep.subr.mxu0 %v8778_v1  ;;  %v3725_v62 = vsub.f32 %v3723_v60, %v3724_v61 }
 0x254   : > { %v3276_v57 = vand.u32 4294901760, %v3275_v54  ;;  %v3726_v63 = vand.u32 4294901760, %v3725_v62 }
 0x2b0   : > { %v2256_v17 = vpop.f32.mrb[2].mxu1 }
 0x2b1   : > { %v2260_v18 = vsel %vm1802_vm3, %v2256_v17, -3.4028235e+38  ;;  %v7891_v19 = vpop.f32.mrb[3].mxu1 }
 0x2b2   : > { %v2261_v20 = vsel %vm1807_vm2, %v2260_v18, -inf }
 0x2b3   : > { %2262 = vmax.xlane.f32.xlu1 %v2261_v20  ;;  %v4173_v20 = vand.u32 4294901760, %v9379_v12 }
 0x323   : > { %v3172_v21 = vpop.f32.mrb[4].mxu0 }
 0x324   : > { %v3176_v22 = vsel %vm1802_vm3, %v3172_v21, -3.4028235e+38  ;;  %v7951_v23 = vpop.f32.mrb[5].mxu0 }
 0x325   : > { %v3177_v24 = vsel %vm1807_vm2, %v3176_v22, -inf }
 0x326   : > { %3178 = vmax.xlane.f32.xlu1 %v3177_v24 }
 0x340   : > { %v2263_v25 = vpop.xlane.xlu1 %2262 }
 0x341   : > { %v2264_v26 = vsub.f32 %v2260_v18, %v2263_v25  ;;  %v4174_v25 = vsub.f32 %v9379_v12, %v4173_v20 }
 0x343   : > { %v2265_v27 = vmul.f32 1.442695, %v2264_v26 }
 0x345   : > { %8535 = vpow2.f32 %v2265_v27 }
 0x34f   : > { %v8536_v30 = vpop.eup %8535 }
 0x350   : > { %v2273_v31 = vsel %vm1807_vm2, %v8536_v30, 0  ;;  %v2267_v32 = vsel %vm1807_vm2, %v8536_v30, 0.0 }
 0x351   : > { %v2341_v33 = vand.u32 4294901760, %v2273_v31  ;;  %2268 = vadd.xlane.f32.xlu0 %v2267_v32 }
 0x353   : > { %v2342_v35 = vsub.f32 %v2273_v31, %v2341_v33  ;;  %v4175_v31 = vand.u32 4294901760, %v4174_v25 }
 0x355   : > { %v2343_v36 = vand.u32 4294901760, %v2342_v35 }
 0x357   : > { %v2344_v39 = vsub.f32 %v2342_v35, %v2343_v36 }
 0x359   : > { %v2345_v40 = vand.u32 4294901760, %v2344_v39 }
 0x35b   : > { %7895 = vmatmul.mubr.f32.vlgmr.msra.gmra.mrb[4].mxu1 %v2345_v40 }
 0x35c   : > { %7898 = vmatpush3.msra.mxu1 %v2356_v41  ;;  %7899 = vmatprep.mubr.msk.f32.mxu1 %vm8777_vm0, %v8778_v1 }
 0x35d   : > { %7902 = vmatprep.subr.mxu1 %v8778_v1 }
 0x363   : > { %7900 = vmatmul.mubr.f32.vlgmr.msra.gmra.mrb[4].mxu1 %v2341_v33 }
 0x364   : > { %7903 = vmatpush3.msra.mxu1 %v2353_v28  ;;  %7904 = vmatprep.mubr.msk.f32.mxu1 %vm8777_vm0, %v8778_v1 }
 0x365   : > { %7907 = vmatprep.subr.mxu1 %v8778_v1 }
 0x367   : > { %5006 = vrot.lane.b32.xlu0 %v9308_v11, %s8780_s19 }
 0x36b   : > { %7905 = vmatmul.mubr.f32.vlgmr.msra.gmra.mrb[4].mxu1 %v2342_v35 }
 0x36c   : > { %7908 = vmatpush3.msra.mxu1 %v2276_v13  ;;  %7909 = vmatprep.mubr.msk.f32.mxu1 %vm8777_vm0, %v8778_v1 }
 0x36d   : > { %7912 = vmatprep.subr.mxu1 %v8778_v1 }
 0x373   : > { %7910 = vmatmul.mubr.f32.vlgmr.msra.gmra.mrb[4].mxu1 %v2343_v36 }
 0x374   : > { %7913 = vmatpush3.msra.mxu1 %v2354_v34  ;;  %7914 = vmatprep.mubr.msk.f32.mxu1 %vm8777_vm0, %v8778_v1 }
 0x375   : > { %7917 = vmatprep.subr.mxu1 %v8778_v1 }
 0x37b   : > { %7915 = vmatmul.mubr.f32.vlgmr.msra.gmra.mrb[4].mxu1 %v2341_v33 }
 0x37c   : > { %7918 = vmatpush3.msra.mxu1 %v2276_v13  ;;  %7919 = vmatprep.mubr.msk.f32.mxu1 %vm8777_vm0, %v8778_v1 }
 0x37d   : > { %7952 = vmatprep.subr.mxu1 %v8778_v1 }
 0x383   : > { %7920 = vmatmul.mubr.f32.vlgmr.msra.gmra.mrb[4].mxu1 %v2341_v33 }
 0x384   : > { %7953 = vmatpush3.msra.mxu1 %v3196_v43  ;;  %7954 = vmatprep.mubr.msk.f32.mxu1 %vm8777_vm0, %v8778_v1 }
 0x385   : > { %7957 = vmatprep.subr.mxu1 %v8778_v1 }
 0x3b3   : > { %v3179_v44 = vpop.xlane.xlu1 %3178 }
 0x3b4   : > { %v3180_v37 = vsub.f32 %v3176_v22, %v3179_v44 }
 0x3b6   : > { %v3181_v47 = vmul.f32 1.442695, %v3180_v37 }
 0x3b8   : > { %8537 = vpow2.f32 %v3181_v47 }
 0x3c2   : > { %v8538_v49 = vpop.eup %8537 }
 0x3c3   : > { %v3193_v0 = vsel %vm1807_vm2, %v8538_v49, 0  ;;  %v3183_v50 = vsel %vm1807_vm2, %v8538_v49, 0.0 }
 0x3c4   : > { %v3261_v29 = vand.u32 4294901760, %v3193_v0  ;;  %3184 = vadd.xlane.f32.xlu1 %v3183_v50 }
 0x3c6   : > { %v3262_v52 = vsub.f32 %v3193_v0, %v3261_v29 }
 0x3c8   : > { %v3263_v53 = vand.u32 4294901760, %v3262_v52 }
 0x3ca   : > { %v3264_v55 = vsub.f32 %v3262_v52, %v3263_v53 }
 0x3cc   : > { %v3265_v56 = vand.u32 4294901760, %v3264_v55 }
 0x3ce   : > { %7955 = vmatmul.mubr.f32.vlgmr.msra.gmra.mrb[6].mxu1 %v3265_v56 }
 0x3cf   : > { %7958 = vmatpush3.msra.mxu1 %v3276_v57  ;;  %7959 = vmatprep.mubr.msk.f32.mxu1 %vm8777_vm0, %v8778_v1 }
 0x3d0   : > { %7962 = vmatprep.subr.mxu1 %v8778_v1 }
 0x3d5   : > { %4540 = vrot.lane.b32.xlu1 %v9263_v46, %s8780_s19 }
 0x3d6   : > { %7960 = vmatmul.mubr.f32.vlgmr.msra.gmra.mrb[6].mxu1 %v3261_v29 }
 0x3d7   : > { %7963 = vmatpush3.msra.mxu1 %v3273_v48  ;;  %7964 = vmatprep.mubr.msk.f32.mxu1 %vm8777_vm0, %v8778_v1 }
 0x3d8   : > { %7967 = vmatprep.subr.mxu1 %v8778_v1 }
 0x3d9   : > { %4542 = vrot.lane.b32.xlu1 %v9261_v45, %s8780_s19 }
 0x3de   : > { %7965 = vmatmul.mubr.f32.vlgmr.msra.gmra.mrb[6].mxu1 %v3262_v52  ;;  %v2269_v4 = vpop.xlane.xlu0 %2268 }
 0x3df   : > { %7968 = vmatpush3.msra.mxu1 %v3196_v43  ;;  %7969 = vmatprep.mubr.msk.f32.mxu1 %vm8777_vm0, %v8778_v1  ;;  %8539 = vrcp.f32 %v2269_v4 }
 0x3e0   : > { %7972 = vmatprep.subr.mxu1 %v8778_v1 }
 0x3e2   : > { %v9407_v38 = vpop.permute.xlu0 %5006 }
 0x3e3   : > { %v9414_v42 = vand.u32 4294901760, %v9407_v38 }
 0x3e6   : > { %7970 = vmatmul.mubr.f32.vlgmr.msra.gmra.mrb[6].mxu1 %v3263_v53 }
 0x3e7   : > { %7973 = vmatpush3.msra.mxu1 %v3274_v51  ;;  %7974 = vmatprep.mubr.msk.f32.mxu1 %vm8777_vm0, %v8778_v1 }
 0x3e8   : > { %7977 = vmatprep.subr.mxu1 %v8778_v1 }
 0x3e9   : > { %v8540_v8 = vpop.eup %8539 }
 0x3ee   : > { %7975 = vmatmul.mubr.f32.vlgmr.msra.gmra.mrb[6].mxu1 %v3261_v29 }
 0x3ef   : > { %7978 = vmatpush3.msra.mxu1 %v3196_v43  ;;  %7979 = vmatprep.mubr.msk.f32.mxu1 %vm8777_vm0, %v8778_v1 }
 0x3f0   : > { %7987 = vmatprep.subr.mxu1 %v8778_v1 }
 0x3f6   : > { %7980 = vmatmul.mubr.f32.vlgmr.msra.gmra.mrb[6].mxu1 %v3261_v29 }
 0x3f7   : > { %7989 = vmatprep.mubr.msk.f32.mxu1 %vm8777_vm0, %v8778_v1  ;;  %7988 = vmatpush3.msra.mxu1 %v3726_v63 }
 0x3f8   : > { %7997 = vmatprep.subr.mxu1 %v8778_v1 }
 0x451   : > { %v3185_v5 = vpop.xlane.xlu1 %3184 }
 0x452   : > { %8541 = vrcp.f32 %v3185_v5 }
 0x455   : > { %v4541_v27 = vpop.permute.xlu1 %4540 }
 0x456   : > { %v2717_v2 = vpop.f32.mrb[4].mxu1  ;;  %v4544_v34 = vsel %vm1807_vm2, %v4541_v27, 0 }
 0x457   : > { %v7921_v3 = vpop.f32.mrb[5].mxu1  ;;  %v2721_v13 = vmul.f32 %v8540_v8, %v2717_v2  ;;  %v4614_v39 = vand.u32 4294901760, %v4544_v34 }
 0x459   : > { %v4092_v21 = vsel %vm1807_vm2, %v2721_v13, 0  ;;  %v4543_v33 = vpop.permute.xlu1 %4542  ;;  %v4615_v43 = vsub.f32 %v4544_v34, %v4614_v39  ;;  %v5090_v34 = vsub.f32 %v9407_v38, %v9414_v42 }
 0x45a   : > { %v4160_v23 = vand.u32 4294901760, %v4092_v21  ;;  %v4546_v36 = vsel %vm1807_vm2, %v4543_v33, 0 }
 0x45b   : > { %v4549_v40 = vand.u32 4294901760, %v4546_v36  ;;  %v4616_v37 = vand.u32 4294901760, %v4615_v43 }
 0x45c   : > { %v8542_v9 = vpop.eup %8541  ;;  %v4161_v28 = vsub.f32 %v4092_v21, %v4160_v23 }
 0x45d   : > { %v4626_v44 = vsub.f32 %v4546_v36, %v4549_v40  ;;  %v4617_v48 = vsub.f32 %v4615_v43, %v4616_v37 }
 0x45e   : > { %v4162_v32 = vand.u32 4294901760, %v4161_v28 }
 0x45f   : > { %v4627_v47 = vand.u32 4294901760, %v4626_v44  ;;  %v4618_v0 = vand.u32 4294901760, %v4617_v48 }
 0x460   : > { %v4163_v35 = vsub.f32 %v4161_v28, %v4162_v32 }
 0x461   : > { %v4628_v49 = vsub.f32 %v4626_v44, %v4627_v47 }
 0x462   : > { %v4164_v41 = vand.u32 4294901760, %v4163_v35 }
 0x463   : > { %v4629_v50 = vand.u32 4294901760, %v4628_v49 }
 0x4c9   : > { %v3637_v10 = vpop.f32.mrb[6].mxu1 }
 0x4ca   : > { %v3641_v14 = vmul.f32 %v8542_v9, %v3637_v10  ;;  %v7981_v17 = vpop.f32.mrb[7].mxu1 }
 0x4cc   : > { %v3643_v18 = vsel %vm1807_vm2, %v3641_v14, 0 }
 0x4cd   : > { %v3711_v19 = vand.u32 4294901760, %v3643_v18 }
 0x4cf   : > { %v3712_v22 = vsub.f32 %v3643_v18, %v3711_v19  ;;  %7990 = vmatmul.mubr.f32.vlgmr.msra.gmra.mrb[8].mxu1 %v3711_v19 }
 0x4d0   : > { %7998 = vmatpush3.msra.mxu1 %v3646_v59  ;;  %7999 = vmatprep.mubr.msk.f32.mxu1 %vm8777_vm0, %v8778_v1 }
 0x4d1   : > { %v3713_v24 = vand.u32 4294901760, %v3712_v22  ;;  %8007 = vmatprep.subr.mxu1 %v8778_v1 }
 0x4d3   : > { %8000 = vmatmul.mubr.f32.vlgmr.msra.gmra.mrb[10].mxu1 %v3713_v24  ;;  %v3714_v26 = vsub.f32 %v3712_v22, %v3713_v24 }
 0x4d4   : > { %8008 = vmatpush3.msra.mxu1 %v3646_v59  ;;  %8009 = vmatprep.mubr.msk.f32.mxu1 %vm8777_vm0, %v8778_v1 }
 0x4d5   : > { %v3715_v30 = vand.u32 4294901760, %v3714_v26  ;;  %8017 = vmatprep.subr.mxu1 %v8778_v1 }
 0x4d7   : > { %7985 = vmatmul.mubr.f32.vlgmr.msra.gmra.mrb[6].mxu0 %v3715_v30  ;;  %8010 = vmatmul.mubr.f32.vlgmr.msra.gmra.mrb[12].mxu1 %v3711_v19 }
 0x4d8   : > { %7993 = vmatpush3.msra.mxu0 %v3723_v60  ;;  %7994 = vmatprep.mubr.msk.f32.mxu0 %vm8777_vm0, %v8778_v1 }
 0x4d9   : > { %8018 = vmatpush3.msra.mxu1 %v4175_v31  ;;  %8019 = vmatprep.mubr.msk.f32.mxu1 %vm8777_vm0, %v8778_v1 }
 0x4da   : > { %8002 = vmatprep.subr.mxu0 %v8778_v1  ;;  %8027 = vmatprep.subr.mxu1 %v8778_v1 }
 0x4db   : > { %7995 = vmatmul.mubr.f32.vlgmr.msra.gmra.mrb[8].mxu0 %v3712_v22  ;;  %8020 = vmatmul.mubr.f32.vlgmr.msra.gmra.mrb[14].mxu1 %v4160_v23 }
 0x4dc   : > { %8003 = vmatpush3.msra.mxu0 %v3724_v61  ;;  %8004 = vmatprep.mubr.msk.f32.mxu0 %vm8777_vm0, %v8778_v1 }
 0x4dd   : > { %8028 = vmatpush3.msra.mxu1 %v4095_v7  ;;  %8029 = vmatprep.mubr.msk.f32.mxu1 %vm8777_vm0, %v8778_v1 }
 0x4de   : > { %8037 = vmatprep.subr.mxu1 %v8778_v1  ;;  %8012 = vmatprep.subr.mxu0 %v8778_v1 }
 0x4df   : > { %8005 = vmatmul.mubr.f32.vlgmr.msra.gmra.mrb[10].mxu0 %v3711_v19  ;;  %8030 = vmatmul.mubr.f32.vlgmr.msra.gmra.mrb[16].mxu1 %v4162_v32 }
 0x4e0   : > { %8038 = vmatpush3.msra.mxu1 %v4095_v7  ;;  %8013 = vmatpush3.msra.mxu0 %v4095_v7 }
 0x4e1   : > { %8014 = vmatprep.mubr.msk.f32.mxu0 %vm8777_vm0, %v8778_v1  ;;  %8039 = vmatprep.mubr.msk.f32.mxu1 %vm8777_vm0, %v8778_v1 }
 0x4e2   : > { %8072 = vmatprep.subr.mxu1 %v8778_v1  ;;  %8022 = vmatprep.subr.mxu0 %v8778_v1 }
 0x4e3   : > { %8015 = vmatmul.mubr.f32.vlgmr.msra.gmra.mrb[12].mxu0 %v4164_v41  ;;  %8040 = vmatmul.mubr.f32.vlgmr.msra.gmra.mrb[18].mxu1 %v4160_v23  ;;  %v5091_v41 = vand.u32 4294901760, %v5090_v34 }
 0x4e4   : > { %8073 = vmatpush3.msra.mxu1 %v9414_v42  ;;  %8023 = vmatpush3.msra.mxu0 %v9379_v12 }
 0x4e5   : > { %8024 = vmatprep.mubr.msk.f32.mxu0 %vm8777_vm0, %v8778_v1  ;;  %8032 = vmatprep.subr.mxu0 %v8778_v1 }
 0x4e6   : > { %8074 = vmatprep.mubr.msk.f32.mxu1 %vm8777_vm0, %v8778_v1  ;;  %8077 = vmatprep.subr.mxu1 %v8778_v1 }
 0x4e7   : > { %8025 = vmatmul.mubr.f32.vlgmr.msra.gmra.mrb[14].mxu0 %v4161_v28 }
 0x4e8   : > { %8033 = vmatpush3.msra.mxu0 %v4173_v20  ;;  %8034 = vmatprep.mubr.msk.f32.mxu0 %vm8777_vm0, %v8778_v1 }
 0x4e9   : > { %8042 = vmatprep.subr.mxu0 %v8778_v1 }
 0x4eb   : > { %8035 = vmatmul.mubr.f32.vlgmr.msra.gmra.mrb[16].mxu0 %v4160_v23 }
 0x4ec   : > { %8044 = vmatprep.mubr.msk.f32.mxu0 %vm8777_vm0, %v8778_v1 }
 0x4ef   : > { %8043 = vmatpush3.xpose.msra.mxu0 %v4549_v40 }
 0x4f0   : > { %8047 = vmatprep.subr.mxu0 %v8778_v1 }
 0x4f2   : > { %8045 = vmatmul.mubr.f32.vlgmr.msra.gmra.mrb[18].mxu0 %v4618_v0 }
 0x4f3   : > { %8048 = vmatpush3.xpose.msra.mxu0 %v4629_v50  ;;  %8049 = vmatprep.mubr.msk.f32.mxu0 %vm8777_vm0, %v8778_v1 }
 0x4f4   : > { %8052 = vmatprep.subr.mxu0 %v8778_v1 }
 0x4fa   : > { %8050 = vmatmul.mubr.f32.vlgmr.msra.gmra.mrb[18].mxu0 %v4614_v39 }
 0x4fb   : > { %8053 = vmatpush3.xpose.msra.mxu0 %v4626_v44  ;;  %8054 = vmatprep.mubr.msk.f32.mxu0 %vm8777_vm0, %v8778_v1 }
 0x4fc   : > { %8057 = vmatprep.subr.mxu0 %v8778_v1 }
 0x502   : > { %8055 = vmatmul.mubr.f32.vlgmr.msra.gmra.mrb[18].mxu0 %v4615_v43 }
 0x503   : > { %8058 = vmatpush3.xpose.msra.mxu0 %v4549_v40  ;;  %8059 = vmatprep.mubr.msk.f32.mxu0 %vm8777_vm0, %v8778_v1 }
 0x504   : > { %8062 = vmatprep.subr.mxu0 %v8778_v1 }
 0x50a   : > { %8060 = vmatmul.mubr.f32.vlgmr.msra.gmra.mrb[18].mxu0 %v4616_v37 }
 0x50b   : > { %8063 = vmatpush3.xpose.msra.mxu0 %v4627_v47  ;;  %8064 = vmatprep.mubr.msk.f32.mxu0 %vm8777_vm0, %v8778_v1 }
 0x50c   : > { %8067 = vmatprep.subr.mxu0 %v8778_v1 }
 0x512   : > { %8065 = vmatmul.mubr.f32.vlgmr.msra.gmra.mrb[18].mxu0 %v4614_v39 }
 0x513   : > { %8068 = vmatpush3.xpose.msra.mxu0 %v4549_v40  ;;  %8069 = vmatprep.mubr.msk.f32.mxu0 %vm8777_vm0, %v8778_v1 }
 0x514   : > { %8102 = vmatprep.subr.mxu0 %v8778_v1 }
 0x51a   : > { %8070 = vmatmul.mubr.f32.vlgmr.msra.gmra.mrb[18].mxu0 %v4614_v39 }
 0x51b   : > { %8104 = vmatprep.mubr.msk.f32.mxu0 %vm8777_vm0, %v8778_v1 }
 0x5a2   : > { %v3793_v29 = vpop.f32.mrb[8].mxu1 }
 0x5a3   : > { %v7991_v51 = vpop.f32.mrb[9].mxu1 }
 0x5a6   : > { %v3941_v52 = vpop.f32.mrb[10].mxu1 }
 0x5a7   : > { %v8001_v53 = vpop.f32.mrb[11].mxu1 }
 0x5aa   : > { %v3717_v54 = vpop.f32.mrb[6].mxu0  ;;  %v4087_v55 = vpop.f32.mrb[12].mxu1 }
 0x5ab   : > { %v3794_v56 = vadd.f32 %v3793_v29, %v3717_v54  ;;  %v7986_v57 = vpop.f32.mrb[7].mxu0  ;;  %v8011_v58 = vpop.f32.mrb[13].mxu1 }
 0x5ae   : > { %v3867_v59 = vpop.f32.mrb[8].mxu0  ;;  %v4242_v60 = vpop.f32.mrb[14].mxu1 }
 0x5af   : > { %v3868_v61 = vadd.f32 %v3867_v59, %v3794_v56  ;;  %v7996_v62 = vpop.f32.mrb[9].mxu0  ;;  %v8021_v63 = vpop.f32.mrb[15].mxu1 }
 0x5b1   : > { %v3942_v2 = vadd.f32 %v3941_v52, %v3868_v61 }
 0x5b2   : > { %v4015_v3 = vpop.f32.mrb[10].mxu0  ;;  %v4390_v4 = vpop.f32.mrb[16].mxu1 }
 0x5b3   : > { %v4016_v5 = vadd.f32 %v4015_v3, %v3942_v2  ;;  %v8006_v6 = vpop.f32.mrb[11].mxu0  ;;  %v8031_v7 = vpop.f32.mrb[17].mxu1 }
 0x5b5   : > { %v4088_v8 = vadd.f32 %v4087_v55, %v4016_v5 }
 0x5b6   : > { %v4166_v9 = vpop.f32.mrb[12].mxu0  ;;  %v4536_v10 = vpop.f32.mrb[18].mxu1 }
 0x5b7   : > { %v4167_v12 = vadd.f32 %v4166_v9, %v4088_v8  ;;  %v8016_v13 = vpop.f32.mrb[13].mxu0  ;;  %v8041_v14 = vpop.f32.mrb[19].mxu1 }
 0x5b9   : > { %v4243_v17 = vadd.f32 %v4242_v60, %v4167_v12 }
 0x5ba   : > { %v4316_v18 = vpop.f32.mrb[14].mxu0 }
 0x5bb   : > { %v4317_v19 = vadd.f32 %v4316_v18, %v4243_v17  ;;  %v8026_v20 = vpop.f32.mrb[15].mxu0 }
 0x5bd   : > { %v4391_v21 = vadd.f32 %v4390_v4, %v4317_v19 }
 0x5be   : > { %v4464_v22 = vpop.f32.mrb[16].mxu0 }
 0x5bf   : > { %v4465_v23 = vadd.f32 %v4464_v22, %v4391_v21  ;;  %v8036_v24 = vpop.f32.mrb[17].mxu0 }
 0x5c1   : > { %v9451_v25 = vadd.f32 %v4536_v10, %v4465_v23 }
 0x5ed   : > { %v4990_v26 = vpop.f32.mrb[18].mxu0 }
 0x5ee   : > { %v4994_v27 = vsel %vm1802_vm3, %v4990_v26, -3.4028235e+38  ;;  %v8071_v28 = vpop.f32.mrb[19].mxu0 }
 0x5ef   : > { %v4995_v30 = vsel %vm1807_vm2, %v4994_v27, -inf }
 0x5f0   : > { %4996 = vmax.xlane.f32.xlu1 %v4995_v30 }
 0x601   : > { %5909 = vrot.lane.b32.xlu1 %v9263_v46, %s8781_s12  ;;  %v5092_v46 = vsub.f32 %v5090_v34, %v5091_v41 }
 0x603   : > { %v5093_v47 = vand.u32 4294901760, %v5092_v46 }
 0x605   : > { %5911 = vrot.lane.b32.xlu1 %v9261_v45, %s8781_s12 }
 0x67d   : > { %v4997_v31 = vpop.xlane.xlu1 %4996 }
 0x67e   : > { %v4998_v32 = vsub.f32 %v4994_v27, %v4997_v31 }
 0x680   : > { %v4999_v33 = vmul.f32 1.442695, %v4998_v32 }
 0x681   : > { %v5910_v51 = vpop.permute.xlu1 %5909 }
 0x682   : > { %8543 = vpow2.f32 %v4999_v33  ;;  %v5913_v59 = vsel %vm1807_vm2, %v5910_v51, 0 }
 0x683   : > { %v5983_v2 = vand.u32 4294901760, %v5913_v59 }
 0x685   : > { %v5912_v57 = vpop.permute.xlu1 %5911  ;;  %v5984_v6 = vsub.f32 %v5913_v59, %v5983_v2 }
 0x686   : > { %v5915_v61 = vsel %vm1807_vm2, %v5912_v57, 0 }
 0x687   : > { %v5918_v3 = vand.u32 4294901760, %v5915_v61  ;;  %v5985_v8 = vand.u32 4294901760, %v5984_v6 }
 0x689   : > { %v5995_v7 = vsub.f32 %v5915_v61, %v5918_v3  ;;  %v5986_v10 = vsub.f32 %v5984_v6, %v5985_v8 }
 0x68b   : > { %v5996_v9 = vand.u32 4294901760, %v5995_v7  ;;  %v5987_v13 = vand.u32 4294901760, %v5986_v10 }
 0x68c   : > { %v8544_v35 = vpop.eup %8543 }
 0x68d   : > { %v5010_v36 = vsel %vm1807_vm2, %v8544_v35, 0  ;;  %v5001_v39 = vsel %vm1807_vm2, %v8544_v35, 0.0  ;;  %v5997_v12 = vsub.f32 %v5995_v7, %v5996_v9 }
 0x68e   : > { %v5078_v40 = vand.u32 4294901760, %v5010_v36  ;;  %5002 = vadd.xlane.f32.xlu0 %v5001_v39 }
 0x68f   : > { %v5998_v14 = vand.u32 4294901760, %v5997_v12 }
 0x690   : > { %v5079_v43 = vsub.f32 %v5010_v36, %v5078_v40 }
 0x692   : > { %v5080_v44 = vand.u32 4294901760, %v5079_v43 }
 0x694   : > { %v5081_v37 = vsub.f32 %v5079_v43, %v5080_v44 }
 0x696   : > { %v5082_v45 = vand.u32 4294901760, %v5081_v37 }
 0x698   : > { %8075 = vmatmul.mubr.f32.vlgmr.msra.gmra.mrb[20].mxu1 %v5082_v45 }
 0x699   : > { %8078 = vmatpush3.msra.mxu1 %v5093_v47  ;;  %8079 = vmatprep.mubr.msk.f32.mxu1 %vm8777_vm0, %v8778_v1 }
 0x69a   : > { %8082 = vmatprep.subr.mxu1 %v8778_v1 }
 0x6a0   : > { %8080 = vmatmul.mubr.f32.vlgmr.msra.gmra.mrb[20].mxu1 %v5078_v40 }
 0x6a1   : > { %8083 = vmatpush3.msra.mxu1 %v5090_v34  ;;  %8084 = vmatprep.mubr.msk.f32.mxu1 %vm8777_vm0, %v8778_v1 }
 0x6a2   : > { %8087 = vmatprep.subr.mxu1 %v8778_v1 }
 0x6a4   : > { %6375 = vrot.lane.b32.xlu0 %v9308_v11, %s8781_s12  ;;  %v1805_v11 = vld [vmem:[#allocation10 + $0x10] sm:$0xff] }
 0x6a5   : > { %v5463_v38 = vand.u32 4294901760, %v1805_v11 }
 0x6a7   : > { %v5540_v48 = vsub.f32 %v1805_v11, %v5463_v38  ;;  %8103 = vmatpush3.msra.mxu0 %v5463_v38 }
 0x6a8   : > { %8085 = vmatmul.mubr.f32.vlgmr.msra.gmra.mrb[20].mxu1 %v5079_v43  ;;  %8112 = vmatprep.subr.mxu0 %v8778_v1 }
 0x6a9   : > { %8088 = vmatpush3.msra.mxu1 %v9414_v42  ;;  %8089 = vmatprep.mubr.msk.f32.mxu1 %vm8777_vm0, %v8778_v1  ;;  %v5541_v49 = vand.u32 4294901760, %v5540_v48 }
 0x6aa   : > { %8092 = vmatprep.subr.mxu1 %v8778_v1 }
 0x6ab   : > { %v5542_v0 = vsub.f32 %v5540_v48, %v5541_v49 }
 0x6ad   : > { %v5543_v50 = vand.u32 4294901760, %v5542_v0 }
 0x6b0   : > { %8090 = vmatmul.mubr.f32.vlgmr.msra.gmra.mrb[20].mxu1 %v5080_v44 }
 0x6b1   : > { %8093 = vmatpush3.msra.mxu1 %v5091_v41  ;;  %8094 = vmatprep.mubr.msk.f32.mxu1 %vm8777_vm0, %v8778_v1 }
 0x6b2   : > { %8097 = vmatprep.subr.mxu1 %v8778_v1 }
 0x6b8   : > { %8095 = vmatmul.mubr.f32.vlgmr.msra.gmra.mrb[20].mxu1 %v5078_v40 }
 0x6b9   : > { %8098 = vmatpush3.msra.mxu1 %v9414_v42  ;;  %8099 = vmatprep.mubr.msk.f32.mxu1 %vm8777_vm0, %v8778_v1 }
 0x6ba   : > { %8107 = vmatprep.subr.mxu1 %v8778_v1 }
 0x6c0   : > { %8100 = vmatmul.mubr.f32.vlgmr.msra.gmra.mrb[20].mxu1 %v5078_v40 }
 0x6c1   : > { %8109 = vmatprep.mubr.msk.f32.mxu1 %vm8777_vm0, %v8778_v1  ;;  %8108 = vmatpush3.msra.mxu1 %v5543_v50 }
 0x6c2   : > { %8117 = vmatprep.subr.mxu1 %v8778_v1 }
 0x71b   : > { %v5003_v42 = vpop.xlane.xlu0 %5002 }
 0x71c   : > { %8545 = vrcp.f32 %v5003_v42 }
 0x71f   : > { %v9491_v62 = vpop.permute.xlu0 %6375 }
 0x720   : > { %v9497_v5 = vand.u32 4294901760, %v9491_v62 }
 0x722   : > { %v6459_v45 = vsub.f32 %v9491_v62, %v9497_v5 }
 0x724   : > { %v6460_v15 = vand.u32 4294901760, %v6459_v45 }
 0x726   : > { %v8546_v29 = vpop.eup %8545 }
 0x793   : > { %v5454_v52 = vpop.f32.mrb[20].mxu1 }
 0x794   : > { %v5458_v53 = vmul.f32 %v8546_v29, %v5454_v52  ;;  %v8101_v54 = vpop.f32.mrb[21].mxu1  ;;  %v1806_v29 = vld [vmem:[#allocation10 + $0x18] sm:$0xff] }
 0x795   : > { %v6832_v51 = vand.u32 4294901760, %v1806_v29 }
 0x796   : > { %v5460_v55 = vsel %vm1807_vm2, %v5458_v53, 0 }
 0x797   : > { %v5528_v56 = vand.u32 4294901760, %v5460_v55  ;;  %v6909_v52 = vsub.f32 %v1806_v29, %v6832_v51 }
 0x799   : > { %v5529_v58 = vsub.f32 %v5460_v55, %v5528_v56  ;;  %8110 = vmatmul.mubr.f32.vlgmr.msra.gmra.mrb[22].mxu1 %v5528_v56  ;;  %v6910_v53 = vand.u32 4294901760, %v6909_v52 }
 0x79a   : > { %8118 = vmatpush3.msra.mxu1 %v5463_v38  ;;  %8119 = vmatprep.mubr.msk.f32.mxu1 %vm8777_vm0, %v8778_v1 }
 0x79b   : > { %v5530_v60 = vand.u32 4294901760, %v5529_v58  ;;  %8127 = vmatprep.subr.mxu1 %v8778_v1  ;;  %v6911_v54 = vsub.f32 %v6909_v52, %v6910_v53 }
 0x79d   : > { %8120 = vmatmul.mubr.f32.vlgmr.msra.gmra.mrb[24].mxu1 %v5530_v60  ;;  %v5531_v63 = vsub.f32 %v5529_v58, %v5530_v60  ;;  %v6912_v55 = vand.u32 4294901760, %v6911_v54 }
 0x79e   : > { %8128 = vmatpush3.msra.mxu1 %v5463_v38  ;;  %8129 = vmatprep.mubr.msk.f32.mxu1 %vm8777_vm0, %v8778_v1 }
 0x79f   : > { %8162 = vmatprep.subr.mxu1 %v8778_v1  ;;  %v5532_v4 = vand.u32 4294901760, %v5531_v63 }
 0x7a1   : > { %8105 = vmatmul.mubr.f32.vlgmr.msra.gmra.mrb[20].mxu0 %v5532_v4  ;;  %8130 = vmatmul.mubr.f32.vlgmr.msra.gmra.mrb[26].mxu1 %v5528_v56 }
 0x7a2   : > { %8163 = vmatpush3.msra.mxu1 %v9497_v5  ;;  %8113 = vmatpush3.msra.mxu0 %v5540_v48 }
 0x7a3   : > { %8114 = vmatprep.mubr.msk.f32.mxu0 %vm8777_vm0, %v8778_v1  ;;  %8122 = vmatprep.subr.mxu0 %v8778_v1 }
 0x7a4   : > { %8164 = vmatprep.mubr.msk.f32.mxu1 %vm8777_vm0, %v8778_v1  ;;  %8167 = vmatprep.subr.mxu1 %v8778_v1 }
 0x7a5   : > { %8115 = vmatmul.mubr.f32.vlgmr.msra.gmra.mrb[22].mxu0 %v5529_v58 }
 0x7a6   : > { %8123 = vmatpush3.msra.mxu0 %v5541_v49  ;;  %8124 = vmatprep.mubr.msk.f32.mxu0 %vm8777_vm0, %v8778_v1  ;;  %v6461_v49 = vsub.f32 %v6459_v45, %v6460_v15 }
 0x7a7   : > { %8132 = vmatprep.subr.mxu0 %v8778_v1 }
 0x7a8   : > { %v6462_v42 = vand.u32 4294901760, %v6461_v49 }
 0x7a9   : > { %8125 = vmatmul.mubr.f32.vlgmr.msra.gmra.mrb[24].mxu0 %v5528_v56 }
 0x7aa   : > { %8134 = vmatprep.mubr.msk.f32.mxu0 %vm8777_vm0, %v8778_v1 }
 0x7ad   : > { %8133 = vmatpush3.xpose.msra.mxu0 %v5918_v3 }
 0x7ae   : > { %8137 = vmatprep.subr.mxu0 %v8778_v1 }
 0x7b0   : > { %8135 = vmatmul.mubr.f32.vlgmr.msra.gmra.mrb[26].mxu0 %v5987_v13 }
 0x7b1   : > { %8138 = vmatpush3.xpose.msra.mxu0 %v5998_v14  ;;  %8139 = vmatprep.mubr.msk.f32.mxu0 %vm8777_vm0, %v8778_v1 }
 0x7b2   : > { %8142 = vmatprep.subr.mxu0 %v8778_v1 }
 0x7b8   : > { %8140 = vmatmul.mubr.f32.vlgmr.msra.gmra.mrb[26].mxu0 %v5983_v2 }
 0x7b9   : > { %8143 = vmatpush3.xpose.msra.mxu0 %v5995_v7  ;;  %8144 = vmatprep.mubr.msk.f32.mxu0 %vm8777_vm0, %v8778_v1 }
 0x7ba   : > { %8147 = vmatprep.subr.mxu0 %v8778_v1 }
 0x7c0   : > { %8145 = vmatmul.mubr.f32.vlgmr.msra.gmra.mrb[26].mxu0 %v5984_v6 }
 0x7c1   : > { %8148 = vmatpush3.xpose.msra.mxu0 %v5918_v3  ;;  %8149 = vmatprep.mubr.msk.f32.mxu0 %vm8777_vm0, %v8778_v1 }
 0x7c2   : > { %8152 = vmatprep.subr.mxu0 %v8778_v1 }
 0x7c8   : > { %8150 = vmatmul.mubr.f32.vlgmr.msra.gmra.mrb[26].mxu0 %v5985_v8 }
 0x7c9   : > { %8153 = vmatpush3.xpose.msra.mxu0 %v5996_v9  ;;  %8154 = vmatprep.mubr.msk.f32.mxu0 %vm8777_vm0, %v8778_v1 }
 0x7ca   : > { %8157 = vmatprep.subr.mxu0 %v8778_v1 }
 0x7d0   : > { %8155 = vmatmul.mubr.f32.vlgmr.msra.gmra.mrb[26].mxu0 %v5983_v2 }
 0x7d1   : > { %8158 = vmatpush3.xpose.msra.mxu0 %v5918_v3  ;;  %8159 = vmatprep.mubr.msk.f32.mxu0 %vm8777_vm0, %v8778_v1 }
 0x7d2   : > { %8192 = vmatprep.subr.mxu0 %v8778_v1 }
 0x7d8   : > { %8160 = vmatmul.mubr.f32.vlgmr.msra.gmra.mrb[26].mxu0 %v5983_v2 }
 0x7d9   : > { %8194 = vmatprep.mubr.msk.f32.mxu0 %vm8777_vm0, %v8778_v1  ;;  %8193 = vmatpush3.msra.mxu0 %v6832_v51 }
 0x7da   : > { %8202 = vmatprep.subr.mxu0 %v8778_v1 }
 0x86c   : > { %v5610_v17 = vpop.f32.mrb[22].mxu1 }
 0x86d   : > { %v8111_v18 = vpop.f32.mrb[23].mxu1 }
 0x870   : > { %v5758_v19 = vpop.f32.mrb[24].mxu1 }
 0x871   : > { %v8121_v20 = vpop.f32.mrb[25].mxu1 }
 0x874   : > { %v5534_v21 = vpop.f32.mrb[20].mxu0  ;;  %v5904_v22 = vpop.f32.mrb[26].mxu1 }
 0x875   : > { %v5611_v23 = vadd.f32 %v5610_v17, %v5534_v21  ;;  %v8106_v24 = vpop.f32.mrb[21].mxu0  ;;  %v8131_v26 = vpop.f32.mrb[27].mxu1 }
 0x876   : > { %v7425_v24 = vld [vmem:[%s9632_s5] ss:$0 sm:$0xff] }
 0x878   : > { %v5684_v27 = vpop.f32.mrb[22].mxu0 }
 0x879   : > { %v5685_v28 = vadd.f32 %v5684_v27, %v5611_v23  ;;  %v8116_v30 = vpop.f32.mrb[23].mxu0 }
 0x87b   : > { %v5759_v31 = vadd.f32 %v5758_v19, %v5685_v28 }
 0x87c   : > { %v5832_v32 = vpop.f32.mrb[24].mxu0 }
 0x87d   : > { %v5833_v33 = vadd.f32 %v5832_v32, %v5759_v31  ;;  %v8126_v34 = vpop.f32.mrb[25].mxu0 }
 0x87f   : > { %v5905_v35 = vadd.f32 %v5904_v22, %v5833_v33 }
 0x881   : > { %v9530_v36 = vadd.f32 %v5905_v35, %v9451_v25 }
 0x8ab   : > { %v6359_v39 = vpop.f32.mrb[26].mxu0 }
 0x8ac   : > { %v6363_v40 = vsel %vm1802_vm3, %v6359_v39, -3.4028235e+38  ;;  %v8161_v41 = vpop.f32.mrb[27].mxu0 }
 0x8ad   : > { %v6364_v43 = vsel %vm1807_vm2, %v6363_v40, -inf }
 0x8ae   : > { %6365 = vmax.xlane.f32.xlu1 %v6364_v43 }
 0x93b   : > { %v6366_v44 = vpop.xlane.xlu1 %6365 }
 0x93c   : > { %v6367_v46 = vsub.f32 %v6363_v40, %v6366_v44 }
 0x93e   : > { %v6368_v37 = vmul.f32 1.442695, %v6367_v46 }
 0x940   : > { %8547 = vpow2.f32 %v6368_v37 }
 0x94a   : > { %v8548_v47 = vpop.eup %8547 }
 0x94b   : > { %v6379_v25 = vsel %vm1807_vm2, %v8548_v47, 0  ;;  %v6370_v11 = vsel %vm1807_vm2, %v8548_v47, 0.0 }
 0x94c   : > { %v6447_v38 = vand.u32 4294901760, %v6379_v25  ;;  %6371 = vadd.xlane.f32.xlu0 %v6370_v11 }
 0x94e   : > { %v6448_v16 = vsub.f32 %v6379_v25, %v6447_v38 }
 0x950   : > { %v6449_v48 = vand.u32 4294901760, %v6448_v16 }
 0x952   : > { %v6450_v0 = vsub.f32 %v6448_v16, %v6449_v48 }
 0x954   : > { %v6451_v50 = vand.u32 4294901760, %v6450_v0 }
 0x956   : > { %8165 = vmatmul.mubr.f32.vlgmr.msra.gmra.mrb[28].mxu1 %v6451_v50 }
 0x957   : > { %8168 = vmatpush3.msra.mxu1 %v6462_v42  ;;  %8169 = vmatprep.mubr.msk.f32.mxu1 %vm8777_vm0, %v8778_v1 }
 0x958   : > { %8172 = vmatprep.subr.mxu1 %v8778_v1 }
 0x95e   : > { %8170 = vmatmul.mubr.f32.vlgmr.msra.gmra.mrb[28].mxu1 %v6447_v38 }
 0x95f   : > { %8173 = vmatpush3.msra.mxu1 %v6459_v45  ;;  %8174 = vmatprep.mubr.msk.f32.mxu1 %vm8777_vm0, %v8778_v1 }
 0x960   : > { %8177 = vmatprep.subr.mxu1 %v8778_v1 }
 0x966   : > { %8175 = vmatmul.mubr.f32.vlgmr.msra.gmra.mrb[28].mxu1 %v6448_v16 }
 0x967   : > { %8178 = vmatpush3.msra.mxu1 %v9497_v5  ;;  %8179 = vmatprep.mubr.msk.f32.mxu1 %vm8777_vm0, %v8778_v1 }
 0x968   : > { %8182 = vmatprep.subr.mxu1 %v8778_v1 }
 0x96e   : > { %8180 = vmatmul.mubr.f32.vlgmr.msra.gmra.mrb[28].mxu1 %v6449_v48 }
 0x96f   : > { %8183 = vmatpush3.msra.mxu1 %v6460_v15  ;;  %8184 = vmatprep.mubr.msk.f32.mxu1 %vm8777_vm0, %v8778_v1 }
 0x970   : > { %8187 = vmatprep.subr.mxu1 %v8778_v1 }
 0x976   : > { %8185 = vmatmul.mubr.f32.vlgmr.msra.gmra.mrb[28].mxu1 %v6447_v38 }
 0x977   : > { %8188 = vmatpush3.msra.mxu1 %v9497_v5  ;;  %8189 = vmatprep.mubr.msk.f32.mxu1 %vm8777_vm0, %v8778_v1 }
 0x978   : > { %8197 = vmatprep.subr.mxu1 %v8778_v1 }
 0x97e   : > { %8190 = vmatmul.mubr.f32.vlgmr.msra.gmra.mrb[28].mxu1 %v6447_v38 }
 0x97f   : > { %8199 = vmatprep.mubr.msk.f32.mxu1 %vm8777_vm0, %v8778_v1  ;;  %8198 = vmatpush3.msra.mxu1 %v6912_v55 }
 0x980   : > { %8207 = vmatprep.subr.mxu1 %v8778_v1 }
 0x9d9   : > { %v6372_v56 = vpop.xlane.xlu0 %6371 }
 0x9da   : > { %8549 = vrcp.f32 %v6372_v56 }
 0x9e4   : > { %v8550_v57 = vpop.eup %8549 }
 0xa51   : > { %v6823_v58 = vpop.f32.mrb[28].mxu1 }
 0xa52   : > { %v6827_v59 = vmul.f32 %v8550_v57, %v6823_v58  ;;  %v8191_v60 = vpop.f32.mrb[29].mxu1 }
 0xa54   : > { %v6829_v61 = vsel %vm1807_vm2, %v6827_v59, 0 }
 0xa55   : > { %v6897_v62 = vand.u32 4294901760, %v6829_v61 }
 0xa57   : > { %v6898_v63 = vsub.f32 %v6829_v61, %v6897_v62  ;;  %8200 = vmatmul.mubr.f32.vlgmr.msra.gmra.mrb[30].mxu1 %v6897_v62 }
 0xa58   : > { %8208 = vmatpush3.msra.mxu1 %v6832_v51  ;;  %8209 = vmatprep.mubr.msk.f32.mxu1 %vm8777_vm0, %v8778_v1 }
 0xa59   : > { %v6899_v2 = vand.u32 4294901760, %v6898_v63  ;;  %8217 = vmatprep.subr.mxu1 %v8778_v1 }
 0xa5b   : > { %8210 = vmatmul.mubr.f32.vlgmr.msra.gmra.mrb[32].mxu1 %v6899_v2  ;;  %v6900_v3 = vsub.f32 %v6898_v63, %v6899_v2 }
 0xa5c   : > { %8218 = vmatpush3.msra.mxu1 %v6832_v51  ;;  %8219 = vmatprep.mubr.msk.f32.mxu1 %vm8777_vm0, %v8778_v1 }
 0xa5d   : > { %v6901_v4 = vand.u32 4294901760, %v6900_v3 }
 0xa5f   : > { %8195 = vmatmul.mubr.f32.vlgmr.msra.gmra.mrb[28].mxu0 %v6901_v4  ;;  %8220 = vmatmul.mubr.f32.vlgmr.msra.gmra.mrb[34].mxu1 %v6897_v62 }
 0xa60   : > { %8203 = vmatpush3.msra.mxu0 %v6909_v52  ;;  %8204 = vmatprep.mubr.msk.f32.mxu0 %vm8777_vm0, %v8778_v1 }
 0xa61   : > { %8212 = vmatprep.subr.mxu0 %v8778_v1 }
 0xa63   : > { %8205 = vmatmul.mubr.f32.vlgmr.msra.gmra.mrb[30].mxu0 %v6898_v63 }
 0xa64   : > { %8213 = vmatpush3.msra.mxu0 %v6910_v53  ;;  %8214 = vmatprep.mubr.msk.f32.mxu0 %vm8777_vm0, %v8778_v1 }
 0xa67   : > { %8215 = vmatmul.mubr.f32.vlgmr.msra.gmra.mrb[32].mxu0 %v6897_v62 }
 0xb2a   : > { %v6979_v5 = vpop.f32.mrb[30].mxu1 }
 0xb2b   : > { %v8201_v6 = vpop.f32.mrb[31].mxu1 }
 0xb2e   : > { %v7127_v7 = vpop.f32.mrb[32].mxu1 }
 0xb2f   : > { %v8211_v8 = vpop.f32.mrb[33].mxu1 }
 0xb32   : > { %v6903_v9 = vpop.f32.mrb[28].mxu0  ;;  %v7273_v10 = vpop.f32.mrb[34].mxu1 }
 0xb33   : > { %v6980_v12 = vadd.f32 %v6979_v5, %v6903_v9  ;;  %v8196_v13 = vpop.f32.mrb[29].mxu0  ;;  %v8221_v14 = vpop.f32.mrb[35].mxu1 }
 0xb36   : > { %v7053_v17 = vpop.f32.mrb[30].mxu0 }
 0xb37   : > { %v7054_v18 = vadd.f32 %v7053_v17, %v6980_v12  ;;  %v8206_v19 = vpop.f32.mrb[31].mxu0 }
 0xb39   : > { %v7128_v20 = vadd.f32 %v7127_v7, %v7054_v18 }
 0xb3a   : > { %v7201_v21 = vpop.f32.mrb[32].mxu0 }
 0xb3b   : > { %v7202_v1 = vadd.f32 %v7201_v21, %v7128_v20  ;;  %v8216_v22 = vpop.f32.mrb[33].mxu0 }
 0xb3d   : > { %v7274_v23 = vadd.f32 %v7273_v10, %v7202_v1 }
 0xb3f   : > { %v7277_v26 = vadd.f32 %v7274_v23, %v9530_v36 }
 0xb41   : > { %v7285_v27 = vadd.f32 %v7425_v24, %v7277_v26 }
 0xb43   : > { %7286 = vst.msk [vmem:[%s324_s10] sm:$0xff] %vm330_vm1, %v7285_v27 }
 0xb44   : > { %8706 = shalt.err (!%p8703_p0)
}
 0xb45   : > { %s8707_s14 = scalar_lea.hbm %s9582_s16, 128  ;;  %s8711_s13 = scalar_lea.hbm %s9633_s6, 256 }
 0xb46   : > { %p8708_p2 = scmp.ne.s32.totalorder %s9582_s16, %s8707_s14  ;;  %p8712_p10 = scmp.lt.u32.totalorder %s9582_s16, %s9633_s6 }
 0xb47   : > { %p8713_p11 = scmp.lt.u32.totalorder %s8711_s13, %s8707_s14  ;;  %p8715_p6 = scmp.lt.u32.totalorder %s8707_s14, %s9582_s16 }
 0xb48   : > { %p8709_p8 = pnand %p8708_p2, %p9651_p5 }
 0xb49   : > { %p8714_p1 = por %p8713_p11, %p8712_p10 }
 0xb4a   : > { %p8710_p4 = pneg %p8709_p8 }
 0xb4b   : > { %p8716_p7 = por %p8715_p6, %p8714_p1 }
 0xb4d   : > { %p8717_p9 = pnand %p8716_p7, %p8710_p4 }
 0xb4f   : > { %8720 = shalt.err (!%p8717_p9)
}
 0xb50   : > { %8458 = dma.vmem_to_hbm [thread:$0]  (%p9651_p5), %s9584_s20, 128, %s9582_s16, %s7288_s8  }
 0xb51 PF: > { %s7313_s10 = sand.u32 1, %s8755_s21   ;;  %p9652_p12 = scmp.ne.s32.totalorder %s9644_s25, 0 }
 0xb52   : > { %p9653_p3 = scmp.ge.s32.totalorder %s8767_s24, 2  ;;  %s7314_s11 = scalar_lea.sflag [#allocation4], %s7313_s10 }
 0xb54   : > { %p8478_p13 = pnand %p9653_p3, %p9652_p12 }
 0xb56   : > { %8750 = dma.done.wait (!%p8478_p13), %s7314_s11, 128  }
 0xb57   : > { %8752 = vsyncadd (!%p8478_p13), %s7314_s11, 4294967168  ;;  %p21_p0 = scmp.ge.s32.totalorder %s8970_s15, 4   ;;  %s9654_s21 = smov %s8759_s22 }
 0xb58   : > { %s9655_s22 = smov %s8763_s23  ;;  %s9656_s23 = smov %s8981_s26 }
 0xb59   : > { %s9657_s24 = smov %s8970_s15  ;;  %23 = sbr.rel (!%p21_p0) target bundleno = 7 (0x7), region = 105 }
 0xb60   :  { %7319 = vsyncpa [#allocation3], 1 }
 0xb61   :  { %7321 = vsyncpa [#allocation3 + $0x1], 1 }
 0xb62   :  { %7322 = vsyncpa [#allocation6], 1 }
 0xb63   :  { %7323 = vsyncpa [#allocation9], 1 }
 0xb64   :  { %7324 = vsyncpa [#allocation4], 1 }
 0xb65   :  { %7326 = vsyncpa [#allocation4 + $0x1], 1 }

</bundles_post_ra>
